<compile_context>
chip_gen: v7x
topology: tpu7x:2x2x1
jax: 0.10.0
libtpu: 0.0.40
codegen_flags: <defaults>
</compile_context>

<pallas_src>
import functools

import jax
import jax.numpy as jnp
from jax.experimental import pallas as pl
from jax.experimental.pallas import tpu as pltpu

LANE = 128      # TPU lane width: only the final HBM-visible channel dims pad to this
SUBLANE = 8     # small alignment quantum for the (tiny) input-channel padding


def _round_up(x, m):
    return (x + m - 1) // m * m


# ----------------------------- fused Pallas kernel --------------------------

def _basicnet_fused_kernel(x_ref, w1_ref, b1_ref, w2_ref, b2_ref, wc_ref, bc_ref,
                           out_ref, *, H, W):
    """Whole BasicNet forward for one image, entirely VMEM-resident.

    x_ref  : (1, H, W, CinP)   bf16  spatially UNPADDED (halo built in-kernel)
    w1_ref : (9*CinP, C1)      bf16  tap-major packed conv1 weight (rows = tap*CinP + c)
    b1_ref : (1, C1)           f32
    w2_ref : (9*C1, OUTP)      bf16  tap-major packed conv2 weight
    b2_ref : (1, OUTP)         f32
    wc_ref : (OUTP, OUTP)      bf16  classifier weight (pre-transposed, zero-padded)
    bc_ref : (1, OUTP)         f32
    out_ref: (1, 2, OUTP)      f32   row 0 = raw GAP features, row 1 = logits
    """
    CinP = x_ref.shape[-1]
    C1 = b1_ref.shape[-1]

    def halo(img):
        # (H, W, C) -> (H+2, W+2, C) zero-padded, built from value concats only
        C = img.shape[-1]
        zc = jnp.zeros((H, 1, C), img.dtype)
        zr = jnp.zeros((1, W + 2, C), img.dtype)
        mid = jnp.concatenate([zc, img, zc], axis=1)
        return jnp.concatenate([zr, mid, zr], axis=0)

    def patch_slab(imgh, C):
        # haloed (H+2, W+2, C) -> (H*W, 9*C): 9 shifted taps concatenated along the
        # contraction axis so the whole conv is ONE MXU matmul (no f32 acc chain).
        taps = [imgh[i:i + H, j:j + W, :] for i in range(3) for j in range(3)]
        return jnp.concatenate(taps, axis=-1).reshape(H * W, 9 * C)

    # --- conv1 + ReLU: single K = 9*CinP matmul, f32 accumulation inside the MXU ---
    xh = halo(x_ref[0])
    h1 = jnp.dot(patch_slab(xh, CinP), w1_ref[...],
                 preferred_element_type=jnp.float32)
    h1 = jnp.maximum(h1 + b1_ref[...], 0.0)                       # (H*W, C1) f32

    # --- conv2 (last conv, no activation) on the VMEM-resident intermediate ---
    h1h = halo(h1.reshape(H, W, C1).astype(jnp.bfloat16))
    h2 = jnp.dot(patch_slab(h1h, C1), w2_ref[...],
                 preferred_element_type=jnp.float32)
    h2 = h2 + b2_ref[...]                                         # (H*W, OUTP) f32

    # --- GAP -> raw features ; ReLU -> features ; fc classifier -> logits ---
    raw = jnp.sum(h2, axis=0, keepdims=True) * (1.0 / (H * W))    # (1, OUTP) f32
    feat = jnp.maximum(raw, 0.0)                                  # ReLU'd features
    logits = jnp.dot(feat.astype(wc_ref.dtype), wc_ref[...],
                     preferred_element_type=jnp.float32) + bc_ref[...]

    # Single packed, lane-dense epilogue store (one output DMA per grid step).
    out_ref[0] = jnp.concatenate([raw, logits], axis=0)           # (2, OUTP)


# ----------------------------- pallas_call wrapper ---------------------------

def basicnet_forward_fused(x_nhwc, w1p, b1p, w2p, b2p, wcp, bcp, *, H, W):
    """x_nhwc: (B, H, W, CinP) bf16 -> packed (B, 2, OUTP) f32 [raw ; logits]."""
    B, _, _, CinP = x_nhwc.shape
    C1 = b1p.shape[-1]
    OUTP = b2p.shape[-1]
    flops = 2 * B * (H * W * 9 * CinP * C1 + H * W * 9 * C1 * OUTP + OUTP * OUTP)
    bytes_accessed = (x_nhwc.size * 2
                      + (w1p.size + w2p.size + wcp.size) * 2
                      + (b1p.size + b2p.size + bcp.size) * 4
                      + B * 2 * OUTP * 4)
    return pl.pallas_call(
        functools.partial(_basicnet_fused_kernel, H=H, W=W),
        out_shape=jax.ShapeDtypeStruct((B, 2, OUTP), jnp.float32),
        grid=(B,),
        in_specs=[
            pl.BlockSpec((1, H, W, CinP), lambda b: (b, 0, 0, 0)),
            pl.BlockSpec((9 * CinP, C1), lambda b: (0, 0)),
            pl.BlockSpec((1, C1), lambda b: (0, 0)),
            pl.BlockSpec((9 * C1, OUTP), lambda b: (0, 0)),
            pl.BlockSpec((1, OUTP), lambda b: (0, 0)),
            pl.BlockSpec((OUTP, OUTP), lambda b: (0, 0)),
            pl.BlockSpec((1, OUTP), lambda b: (0, 0)),
        ],
        out_specs=pl.BlockSpec((1, 2, OUTP), lambda b: (b, 0, 0)),
        compiler_params=pltpu.CompilerParams(
            dimension_semantics=("parallel",)),    # megacore batch split on v7x
        cost_estimate=pl.CostEstimate(flops=flops, transcendentals=0,
                                      bytes_accessed=bytes_accessed),
    )(x_nhwc, w1p, b1p, w2p, b2p, wcp, bcp)


# ------------------------------- model ---------------------------------------

class BasicNetPallas:
    """Forward-pass equivalent of BasicNet with a small synthetic convnet."""

    def __init__(self, key, in_channels=4, hidden=8, out_dim=32, n_classes=10):
        k1, k2, k3 = jax.random.split(key, 3)
        # 'kaiming' init (normal, std = sqrt(2 / fan_in)); zero biases.
        std1 = (2.0 / (in_channels * 9)) ** 0.5
        std2 = (2.0 / (hidden * 9)) ** 0.5
        std3 = (2.0 / out_dim) ** 0.5
        self.w1 = std1 * jax.random.normal(k1, (hidden, in_channels, 3, 3), jnp.float32)
        self.b1 = jnp.zeros((hidden,), jnp.float32)
        self.w2 = std2 * jax.random.normal(k2, (out_dim, hidden, 3, 3), jnp.float32)
        self.b2 = jnp.zeros((out_dim,), jnp.float32)
        self.clf_w = std3 * jax.random.normal(k3, (n_classes, out_dim), jnp.float32)
        self.clf_b = jnp.zeros((n_classes,), jnp.float32)

        self.in_channels = in_channels
        self.hidden = hidden
        self.out_dim = out_dim
        self.n_classes = n_classes

        # Padded sizes: input channels to a small quantum; the VMEM-resident
        # intermediate (hidden) is deliberately NOT padded; only the final
        # HBM-visible epilogue width pads to 128 lanes.
        self.cin_p = _round_up(in_channels, SUBLANE)
        self.c1 = hidden
        self.out_p = max(_round_up(out_dim, LANE), _round_up(n_classes, LANE))

        # Precompute matmul-ready packed weights (tap-major concatenated-K, bf16) —
        # no per-forward weight relayout.
        self.w1p = self._pack_conv(self.w1, self.cin_p, self.c1)
        self.b1p = self._pack_bias(self.b1, self.c1)
        self.w2p = self._pack_conv(self.w2, self.c1, self.out_p)
        self.b2p = self._pack_bias(self.b2, self.out_p)
        wc = jnp.pad(self.clf_w.T,
                     ((0, self.out_p - out_dim), (0, self.out_p - n_classes)))
        self.wcp = wc.astype(jnp.bfloat16)
        self.bcp = self._pack_bias(self.clf_b, self.out_p)

    @staticmethod
    def _pack_conv(w, cin_p, cout_p):
        """(O, C, 3, 3) -> (9*cin_p, cout_p) bf16; row index = (kh*3+kw)*cin_p + c."""
        o, c, kh, kw = w.shape
        wt = jnp.transpose(w, (2, 3, 1, 0)).reshape(kh * kw, c, o)
        wt = jnp.pad(wt, ((0, 0), (0, cin_p - c), (0, cout_p - o)))
        return wt.reshape(kh * kw * cin_p, cout_p).astype(jnp.bfloat16)

    @staticmethod
    def _pack_bias(b, n_p):
        return jnp.pad(b, (0, n_p - b.shape[0])).reshape(1, n_p).astype(jnp.float32)

    def forward(self, x):
        # NCHW (PyTorch convention) -> NHWC once, at the model boundary only.
        # No spatial halo pad here: the halo is built in-kernel (no extra HBM copy).
        B, Cin, H, W = x.shape
        xh = jnp.pad(jnp.transpose(x, (0, 2, 3, 1)).astype(jnp.bfloat16),
                     ((0, 0), (0, 0), (0, 0), (0, self.cin_p - Cin)))

        # One fused pallas_call: conv1+ReLU -> conv2 -> GAP -> ReLU -> fc.
        packed = basicnet_forward_fused(xh, self.w1p, self.b1p, self.w2p, self.b2p,
                                        self.wcp, self.bcp, H=H, W=W)

        raw_features = packed[:, 0, :self.out_dim]        # (B, out_dim) f32
        logits = packed[:, 1, :self.n_classes]            # (B, n_classes) f32
        # classifier_no_act = False -> classifier consumed ReLU'ed features in-kernel;
        # recompute features = ReLU(raw) here (cheaper than a third output DMA).
        features = jax.nn.relu(raw_features)

        return {
            'raw_features': raw_features,   # (B, out_dim)
            'features': features,           # (B, out_dim)
            'logits': logits,               # (B, n_classes)
        }

    __call__ = forward


# ------------------------------ reference ------------------------------------

def _reference_forward(net, x):
    """Pure-jnp f32 reference of the same synthetic BasicNet forward."""
    def conv(h, w, b):
        Hh, Ww = h.shape[1], h.shape[2]
        hp = jnp.pad(h, ((0, 0), (1, 1), (1, 1), (0, 0)))
        out = b.reshape(1, 1, 1, -1)
        for i in range(3):
            for j in range(3):
                out = out + jnp.einsum('bhwc,oc->bhwo',
                                       hp[:, i:i + Hh, j:j + Ww, :], w[:, :, i, j])
        return out
    h = jnp.transpose(x, (0, 2, 3, 1)).astype(jnp.float32)
    h = jax.nn.relu(conv(h, net.w1, net.b1))
    h = conv(h, net.w2, net.b2)
    raw = h.mean(axis=(1, 2))
    feat = jax.nn.relu(raw)
    logits = feat @ net.clf_w.T + net.clf_b
    return raw, feat, logits


if __name__ == "__main__":
    key = jax.random.PRNGKey(0)
    k_params, k_x = jax.random.split(key)

    net = BasicNetPallas(k_params, in_channels=4, hidden=8, out_dim=32, n_classes=10)
    x = jax.random.normal(k_x, (2, 4, 16, 16), jnp.float32)   # NCHW

    outputs = net(x)
    jax.block_until_ready(outputs)

    assert outputs['raw_features'].shape == (2, 32)
    assert outputs['features'].shape == (2, 32)
    assert outputs['logits'].shape == (2, 10)
    assert bool(jnp.all(outputs['features'] >= 0.0))

    # Numerical sanity check vs a pure-jnp f32 reference (bf16 matmul tolerance).
    ref_raw, ref_feat, ref_logits = _reference_forward(net, x)
    assert bool(jnp.allclose(outputs['raw_features'], ref_raw, atol=5e-2, rtol=5e-2))
    assert bool(jnp.allclose(outputs['features'], ref_feat, atol=5e-2, rtol=5e-2))
    assert bool(jnp.allclose(outputs['logits'], ref_logits, atol=5e-2, rtol=5e-2))

    print("KERNEL_OK")
</pallas_src>

<mosaic_0001>
module attributes {stable_mosaic.version = 11 : i64} {
  func.func @_basicnet_fused_kernel(%arg0: i32, %arg1: memref<1x16x16x8xbf16, #tpu.memory_space<vmem>>, %arg2: memref<72x8xbf16, #tpu.memory_space<vmem>>, %arg3: memref<1x8xf32, #tpu.memory_space<vmem>>, %arg4: memref<72x128xbf16, #tpu.memory_space<vmem>>, %arg5: memref<1x128xf32, #tpu.memory_space<vmem>>, %arg6: memref<128x128xbf16, #tpu.memory_space<vmem>>, %arg7: memref<1x128xf32, #tpu.memory_space<vmem>>, %arg8: memref<1x2x128xf32, #tpu.memory_space<vmem>>) attributes {dimension_semantics = [#tpu.dimension_semantics<parallel>], iteration_bounds = array<i64: 2>, scalar_prefetch = 0 : i64, scratch_operands = 0 : i64, tpu.core_type = #tpu.core_type<tc>, window_params = [{transform_indices = @transform_0, window_bounds = array<i64: 1, 16, 16, 8>}, {pipeline_mode = #tpu.pipeline_mode<synchronous>, transform_indices = @transform_1, window_bounds = array<i64: 72, 8>}, {pipeline_mode = #tpu.pipeline_mode<synchronous>, transform_indices = @transform_2, window_bounds = array<i64: 1, 8>}, {pipeline_mode = #tpu.pipeline_mode<synchronous>, transform_indices = @transform_3, window_bounds = array<i64: 72, 128>}, {pipeline_mode = #tpu.pipeline_mode<synchronous>, transform_indices = @transform_4, window_bounds = array<i64: 1, 128>}, {pipeline_mode = #tpu.pipeline_mode<synchronous>, transform_indices = @transform_5, window_bounds = array<i64: 128, 128>}, {pipeline_mode = #tpu.pipeline_mode<synchronous>, transform_indices = @transform_6, window_bounds = array<i64: 1, 128>}, {transform_indices = @transform_7, window_bounds = array<i64: 1, 2, 128>}]} {
    %c0 = arith.constant 0 : index
    %c0_0 = arith.constant 0 : index
    %c0_1 = arith.constant 0 : index
    %c0_2 = arith.constant 0 : index
    %0 = vector.load %arg1[%c0, %c0_0, %c0_1, %c0_2] : memref<1x16x16x8xbf16, #tpu.memory_space<vmem>>, vector<1x16x16x8xbf16>
    %1 = vector.shape_cast %0 : vector<1x16x16x8xbf16> to vector<16x16x8xbf16>
    %cst = arith.constant 0.000000e+00 : bf16
    %2 = vector.broadcast %cst : bf16 to vector<16x1x8xbf16>
    %cst_3 = arith.constant 0.000000e+00 : bf16
    %3 = vector.broadcast %cst_3 : bf16 to vector<1x18x8xbf16>
    %4 = tpu.concatenate %2, %1, %2 in 1 : vector<16x1x8xbf16>, vector<16x16x8xbf16>, vector<16x1x8xbf16> -> vector<16x18x8xbf16>
    %5 = tpu.concatenate %3, %4, %3 in 0 : vector<1x18x8xbf16>, vector<16x18x8xbf16>, vector<1x18x8xbf16> -> vector<18x18x8xbf16>
    %6 = vector.extract_strided_slice %5 {offsets = [0, 0, 0], sizes = [16, 16, 8], strides = [1, 1, 1]} : vector<18x18x8xbf16> to vector<16x16x8xbf16>
    %7 = vector.extract_strided_slice %5 {offsets = [0, 1, 0], sizes = [16, 16, 8], strides = [1, 1, 1]} : vector<18x18x8xbf16> to vector<16x16x8xbf16>
    %8 = vector.extract_strided_slice %5 {offsets = [0, 2, 0], sizes = [16, 16, 8], strides = [1, 1, 1]} : vector<18x18x8xbf16> to vector<16x16x8xbf16>
    %9 = vector.extract_strided_slice %5 {offsets = [1, 0, 0], sizes = [16, 16, 8], strides = [1, 1, 1]} : vector<18x18x8xbf16> to vector<16x16x8xbf16>
    %10 = vector.extract_strided_slice %5 {offsets = [1, 1, 0], sizes = [16, 16, 8], strides = [1, 1, 1]} : vector<18x18x8xbf16> to vector<16x16x8xbf16>
    %11 = vector.extract_strided_slice %5 {offsets = [1, 2, 0], sizes = [16, 16, 8], strides = [1, 1, 1]} : vector<18x18x8xbf16> to vector<16x16x8xbf16>
    %12 = vector.extract_strided_slice %5 {offsets = [2, 0, 0], sizes = [16, 16, 8], strides = [1, 1, 1]} : vector<18x18x8xbf16> to vector<16x16x8xbf16>
    %13 = vector.extract_strided_slice %5 {offsets = [2, 1, 0], sizes = [16, 16, 8], strides = [1, 1, 1]} : vector<18x18x8xbf16> to vector<16x16x8xbf16>
    %14 = vector.extract_strided_slice %5 {offsets = [2, 2, 0], sizes = [16, 16, 8], strides = [1, 1, 1]} : vector<18x18x8xbf16> to vector<16x16x8xbf16>
    %15 = tpu.concatenate %6, %7, %8, %9, %10, %11, %12, %13, %14 in 2 : vector<16x16x8xbf16>, vector<16x16x8xbf16>, vector<16x16x8xbf16>, vector<16x16x8xbf16>, vector<16x16x8xbf16>, vector<16x16x8xbf16>, vector<16x16x8xbf16>, vector<16x16x8xbf16>, vector<16x16x8xbf16> -> vector<16x16x72xbf16>
    %16 = vector.shape_cast %15 : vector<16x16x72xbf16> to vector<256x72xbf16>
    %c0_4 = arith.constant 0 : index
    %c0_5 = arith.constant 0 : index
    %17 = vector.load %arg2[%c0_4, %c0_5] : memref<72x8xbf16, #tpu.memory_space<vmem>>, vector<72x8xbf16>
    %cst_6 = arith.constant dense<0.000000e+00> : vector<256x8xf32>
    %18 = tpu.matmul %16, %17, %cst_6 {dimension_numbers = #tpu.dot_dimension_numbers<[1], [0], [0], [1], [0, 0, 1, 1], [], []>} : vector<256x72xbf16>, vector<72x8xbf16>, vector<256x8xf32> -> vector<256x8xf32>
    %c0_7 = arith.constant 0 : index
    %c0_8 = arith.constant 0 : index
    %19 = vector.load %arg3[%c0_7, %c0_8] : memref<1x8xf32, #tpu.memory_space<vmem>>, vector<1x8xf32>
    %20 = vector.broadcast %19 : vector<1x8xf32> to vector<256x8xf32>
    %21 = arith.addf %18, %20 : vector<256x8xf32>
    %cst_9 = arith.constant 0.000000e+00 : f32
    %22 = vector.broadcast %cst_9 : f32 to vector<256x8xf32>
    %23 = arith.maximumf %21, %22 : vector<256x8xf32>
    %24 = vector.shape_cast %23 : vector<256x8xf32> to vector<16x16x8xf32>
    %25 = arith.truncf %24 : vector<16x16x8xf32> to vector<16x16x8xbf16>
    %cst_10 = arith.constant 0.000000e+00 : bf16
    %26 = vector.broadcast %cst_10 : bf16 to vector<16x1x8xbf16>
    %cst_11 = arith.constant 0.000000e+00 : bf16
    %27 = vector.broadcast %cst_11 : bf16 to vector<1x18x8xbf16>
    %28 = tpu.concatenate %26, %25, %26 in 1 : vector<16x1x8xbf16>, vector<16x16x8xbf16>, vector<16x1x8xbf16> -> vector<16x18x8xbf16>
    %29 = tpu.concatenate %27, %28, %27 in 0 : vector<1x18x8xbf16>, vector<16x18x8xbf16>, vector<1x18x8xbf16> -> vector<18x18x8xbf16>
    %30 = vector.extract_strided_slice %29 {offsets = [0, 0, 0], sizes = [16, 16, 8], strides = [1, 1, 1]} : vector<18x18x8xbf16> to vector<16x16x8xbf16>
    %31 = vector.extract_strided_slice %29 {offsets = [0, 1, 0], sizes = [16, 16, 8], strides = [1, 1, 1]} : vector<18x18x8xbf16> to vector<16x16x8xbf16>
    %32 = vector.extract_strided_slice %29 {offsets = [0, 2, 0], sizes = [16, 16, 8], strides = [1, 1, 1]} : vector<18x18x8xbf16> to vector<16x16x8xbf16>
    %33 = vector.extract_strided_slice %29 {offsets = [1, 0, 0], sizes = [16, 16, 8], strides = [1, 1, 1]} : vector<18x18x8xbf16> to vector<16x16x8xbf16>
    %34 = vector.extract_strided_slice %29 {offsets = [1, 1, 0], sizes = [16, 16, 8], strides = [1, 1, 1]} : vector<18x18x8xbf16> to vector<16x16x8xbf16>
    %35 = vector.extract_strided_slice %29 {offsets = [1, 2, 0], sizes = [16, 16, 8], strides = [1, 1, 1]} : vector<18x18x8xbf16> to vector<16x16x8xbf16>
    %36 = vector.extract_strided_slice %29 {offsets = [2, 0, 0], sizes = [16, 16, 8], strides = [1, 1, 1]} : vector<18x18x8xbf16> to vector<16x16x8xbf16>
    %37 = vector.extract_strided_slice %29 {offsets = [2, 1, 0], sizes = [16, 16, 8], strides = [1, 1, 1]} : vector<18x18x8xbf16> to vector<16x16x8xbf16>
    %38 = vector.extract_strided_slice %29 {offsets = [2, 2, 0], sizes = [16, 16, 8], strides = [1, 1, 1]} : vector<18x18x8xbf16> to vector<16x16x8xbf16>
    %39 = tpu.concatenate %30, %31, %32, %33, %34, %35, %36, %37, %38 in 2 : vector<16x16x8xbf16>, vector<16x16x8xbf16>, vector<16x16x8xbf16>, vector<16x16x8xbf16>, vector<16x16x8xbf16>, vector<16x16x8xbf16>, vector<16x16x8xbf16>, vector<16x16x8xbf16>, vector<16x16x8xbf16> -> vector<16x16x72xbf16>
    %40 = vector.shape_cast %39 : vector<16x16x72xbf16> to vector<256x72xbf16>
    %c0_12 = arith.constant 0 : index
    %c0_13 = arith.constant 0 : index
    %41 = vector.load %arg4[%c0_12, %c0_13] : memref<72x128xbf16, #tpu.memory_space<vmem>>, vector<72x128xbf16>
    %cst_14 = arith.constant dense<0.000000e+00> : vector<256x128xf32>
    %42 = tpu.matmul %40, %41, %cst_14 {dimension_numbers = #tpu.dot_dimension_numbers<[1], [0], [0], [1], [0, 0, 1, 1], [], []>} : vector<256x72xbf16>, vector<72x128xbf16>, vector<256x128xf32> -> vector<256x128xf32>
    %c0_15 = arith.constant 0 : index
    %c0_16 = arith.constant 0 : index
    %43 = vector.load %arg5[%c0_15, %c0_16] : memref<1x128xf32, #tpu.memory_space<vmem>>, vector<1x128xf32>
    %44 = vector.broadcast %43 : vector<1x128xf32> to vector<256x128xf32>
    %45 = arith.addf %42, %44 : vector<256x128xf32>
    %cst_17 = arith.constant dense<0.000000e+00> : vector<128xf32>
    %46 = vector.multi_reduction <add>, %45, %cst_17 [0] : vector<256x128xf32> to vector<128xf32>
    %47 = vector.shape_cast %46 : vector<128xf32> to vector<1x128xf32>
    %cst_18 = arith.constant 3.906250e-03 : f32
    %48 = vector.broadcast %cst_18 : f32 to vector<1x128xf32>
    %49 = arith.mulf %47, %48 : vector<1x128xf32>
    %cst_19 = arith.constant 0.000000e+00 : f32
    %50 = vector.broadcast %cst_19 : f32 to vector<1x128xf32>
    %51 = arith.maximumf %49, %50 : vector<1x128xf32>
    %52 = arith.truncf %51 : vector<1x128xf32> to vector<1x128xbf16>
    %c0_20 = arith.constant 0 : index
    %c0_21 = arith.constant 0 : index
    %53 = vector.load %arg6[%c0_20, %c0_21] : memref<128x128xbf16, #tpu.memory_space<vmem>>, vector<128x128xbf16>
    %cst_22 = arith.constant dense<0.000000e+00> : vector<1x128xf32>
    %54 = tpu.matmul %52, %53, %cst_22 {dimension_numbers = #tpu.dot_dimension_numbers<[1], [0], [0], [1], [0, 0, 1, 1], [], []>} : vector<1x128xbf16>, vector<128x128xbf16>, vector<1x128xf32> -> vector<1x128xf32>
    %c0_23 = arith.constant 0 : index
    %c0_24 = arith.constant 0 : index
    %55 = vector.load %arg7[%c0_23, %c0_24] : memref<1x128xf32, #tpu.memory_space<vmem>>, vector<1x128xf32>
    %56 = arith.addf %54, %55 : vector<1x128xf32>
    %57 = tpu.concatenate %49, %56 in 0 : vector<1x128xf32>, vector<1x128xf32> -> vector<2x128xf32>
    %c0_25 = arith.constant 0 : index
    %c0_26 = arith.constant 0 : index
    %c0_27 = arith.constant 0 : index
    %58 = vector.load %arg8[%c0_25, %c0_26, %c0_27] : memref<1x2x128xf32, #tpu.memory_space<vmem>>, vector<1x2x128xf32>
    %59 = vector.shape_cast %58 : vector<1x2x128xf32> to vector<2x128xf32>
    %60 = vector.shape_cast %57 : vector<2x128xf32> to vector<1x2x128xf32>
    tpu.vector_store %arg8[%c0_25, %c0_26, %c0_27], %60 {strides = array<i32>} : memref<1x2x128xf32, #tpu.memory_space<vmem>>, vector<1x2x128xf32>,
    return
  }
  func.func @transform_0(%arg0: i32) -> (i32, i32, i32, i32) {
    %c0_i32 = arith.constant 0 : i32
    %c0_i32_0 = arith.constant 0 : i32
    %c0_i32_1 = arith.constant 0 : i32
    %c0_i32_2 = arith.constant 0 : i32
    return %arg0, %c0_i32, %c0_i32_0, %c0_i32_1 : i32, i32, i32, i32
  }
  func.func @transform_1(%arg0: i32) -> (i32, i32) {
    %c0_i32 = arith.constant 0 : i32
    %c0_i32_0 = arith.constant 0 : i32
    %c0_i32_1 = arith.constant 0 : i32
    return %c0_i32, %c0_i32_0 : i32, i32
  }
  func.func @transform_2(%arg0: i32) -> (i32, i32) {
    %c0_i32 = arith.constant 0 : i32
    %c0_i32_0 = arith.constant 0 : i32
    %c0_i32_1 = arith.constant 0 : i32
    return %c0_i32, %c0_i32_0 : i32, i32
  }
  func.func @transform_3(%arg0: i32) -> (i32, i32) {
    %c0_i32 = arith.constant 0 : i32
    %c0_i32_0 = arith.constant 0 : i32
    %c0_i32_1 = arith.constant 0 : i32
    return %c0_i32, %c0_i32_0 : i32, i32
  }
  func.func @transform_4(%arg0: i32) -> (i32, i32) {
    %c0_i32 = arith.constant 0 : i32
    %c0_i32_0 = arith.constant 0 : i32
    %c0_i32_1 = arith.constant 0 : i32
    return %c0_i32, %c0_i32_0 : i32, i32
  }
  func.func @transform_5(%arg0: i32) -> (i32, i32) {
    %c0_i32 = arith.constant 0 : i32
    %c0_i32_0 = arith.constant 0 : i32
    %c0_i32_1 = arith.constant 0 : i32
    return %c0_i32, %c0_i32_0 : i32, i32
  }
  func.func @transform_6(%arg0: i32) -> (i32, i32) {
    %c0_i32 = arith.constant 0 : i32
    %c0_i32_0 = arith.constant 0 : i32
    %c0_i32_1 = arith.constant 0 : i32
    return %c0_i32, %c0_i32_0 : i32, i32
  }
  func.func @transform_7(%arg0: i32) -> (i32, i32, i32) {
    %c0_i32 = arith.constant 0 : i32
    %c0_i32_0 = arith.constant 0 : i32
    %c0_i32_1 = arith.constant 0 : i32
    return %arg0, %c0_i32, %c0_i32_0 : i32, i32, i32
  }
}

</mosaic_0001>

<bundles_post_ra>
// kernel: tpu_custom_call.1
= control target key start
LH: loop header
LB: loop body
LE: loop exit
PB: predicated region body
PF: predicated region fallthrough
CT: control target
= control target key end

     0   :  { %12 = vsyncpa [#allocation3], 0  ;;  %s4871_s0 = inlined_call_operand.vmem [shape: bf16[2,16,16,8], index: 0, kind: input, shape index: {}]   ;;  %s4872_s1 = inlined_call_operand.vmem [shape: bf16[72,8], index: 1, kind: input, shape index: {}]   ;;  %s4873_s2 = inlined_call_operand.vmem [shape: f32[1,8], index: 2, kind: input, shape index: {}]   ;;  %s4874_s3 = inlined_call_operand.vmem [shape: bf16[72,128], index: 3, kind: input, shape index: {}]   ;;  %s4875_s4 = inlined_call_operand.vmem [shape: f32[1,128], index: 4, kind: input, shape index: {}]   ;;  %s4876_s5 = inlined_call_operand.vmem [shape: bf16[128,128], index: 5, kind: input, shape index: {}]   ;;  %s4877_s6 = inlined_call_operand.vmem [shape: f32[1,128], index: 6, kind: input, shape index: {}]   ;;  %s4878_s7 = inlined_call_operand.hbm [shape: f32[2,2,128], index: 7, kind: output, shape index: {}]  }
   0x1   :  { %14 = vsyncpa [#allocation3 + $0x1], 0  ;;  %s3507_s24 = smov 0   ;;  %s3509_s25 = smov 0  }
   0x2   :  { %s3511_s26 = smov 0   ;;  %s3513_s27 = smov 0  }
   0x3 LB: > { %s3528_s28 = sadd.s32 4294967295, %s3453_s27   ;;  %s3069_s29 = sadd.s32 4294967294, %s3453_s27   ;;  %s3453_s27 = sphi %s3513_s27, %s4886_s27   ;;  %s3449_s26 = sphi %s3511_s26, %s4885_s26   ;;  %s3445_s25 = sphi %s3509_s25, %s4884_s25   ;;  %s3441_s24 = sphi %s3507_s24, %s4883_s24  }
   0x4   : > { %s3532_s30 = sadd.s32 1, %s3453_s27   ;;  %s179_s8 = sadd.s32 1, %s3449_s26 }
   0x5   : > { %s176_s9 = ssub.s32 %s3453_s27, %s3532_s30  ;;  %p189_p0 = scmp.ne.s32.totalorder %s3449_s26, %s3445_s25 }
   0x6   : > { %p177_p1 = scmp.eq.s32.totalorder %s176_s9, 0  ;;  %p190_p2 = scmp.eq.s32.totalorder %s3528_s28, 1 }
   0x7   : > { %p195_p3 = scmp.ne.s32.totalorder %s3445_s25, %s3441_s24  ;;  %p196_p4 = scmp.eq.s32.totalorder %s3069_s29, 1 }
   0x8   : > { %s3543_s10 = scalar_select %p177_p1, %s3449_s26, %s179_s8  }
   0x9   : > { %p3545_p5 = por %p190_p2, %p189_p0  ;;  %p3549_p6 = por %p196_p4, %p195_p3 }
   0xa   : > { %p3072_p7 = scmp.ge.s32.totalorder %s3453_s27, 1  ;;  %p240_p8 = scmp.lt.s32.totalorder %s3453_s27, 3 }
   0xc   : > { %p241_p9 = pnand %p3072_p7, %p240_p8 }
   0xd   : > { %v3455_v0 = vmov (!%p241_p9), 0   ;;  %p272_p10 = scmp.lt.s32.totalorder (!%p241_p9), %s3528_s28, 1  ;;  %s3456_s13 = smov (!%p241_p9), 16   ;;  %vm535_vm0 = vsmask.f32 (!%p241_p9), 256  ;;  %vm534_vm1 = vcmask (!%p241_p9), 1040384  }
   0xe   : > { %244 = sbr.rel (%p241_p9) target bundleno = 1255 (0x4e7), region = 48  ;;  %v3556_v1 = vrot.slane (!%p241_p9), %v3455_v0, 1  ;;  %s3457_s14 = smov (!%p241_p9), 8   ;;  %vm3573_vm2 = vmand (!%p241_p9), %vm534_vm1, %vm535_vm0  ;;  %vm821_vm3 = vcmask (!%p241_p9), 1046528   ;;  %vm569_vm4 = vsmask.f32 (!%p241_p9), 7424 }
   0xf   : > { %s3458_s20 = smov (!%p241_p9), 24   ;;  %v3365_v30 = vld [vmem:[%s4872_s1] sm:$0xff] (!%p241_p9)   ;;  %s3459_s23 = smov (!%p241_p9), 48   ;;  %v3366_v38 = vld [vmem:[%s4872_s1 + $0x8] sm:$0xff] (!%p241_p9)   ;;  %v3367_v43 = vld [vmem:[%s4872_s1 + $0x10] sm:$0xff] (!%p241_p9)   ;;  %vm1450_vm5 = vcmask (!%p241_p9), 1043456  }
  0x10   : > { %869 = vrot.lane.b32.xlu1 (!%p241_p9), %v3556_v1, %s3456_s13  ;;  %758 = vrot.lane.b32.xlu0 (!%p241_p9), %v3556_v1, %s3457_s14  ;;  %v3369_v52 = vld [vmem:[%s4872_s1 + $0x18] sm:$0xff] (!%p241_p9)   ;;  %s3461_s21 = smov (!%p241_p9), 32   ;;  %s3462_s22 = smov (!%p241_p9), 56   ;;  %vm1110_vm6 = vcmask (!%p241_p9), 64512   ;;  %vm1143_vm7 = vcmask (!%p241_p9), 130048   ;;  %vm1176_vm8 = vcmask (!%p241_p9), 195584  }
  0x11   : > { %3200 = vmatprep.subr.bf16.mxu0 (!%p241_p9), %v3365_v30  ;;  %s3463_s29 = smov (!%p241_p9), 64   ;;  %vm1209_vm9 = vcmask (!%p241_p9), 261120   ;;  %vm1242_vm10 = vcmask (!%p241_p9), 326656   ;;  %vm1275_vm11 = vcmask (!%p241_p9), 392192   ;;  %vm1308_vm12 = vcmask (!%p241_p9), 457728   ;;  %s3145_s17 = sshll.u32 (!%p241_p9), %s3528_s28, 5 }
  0x12   : > { %3201 = vmatpush3.bf16.msra.mxu0 (!%p241_p9), %v3365_v30  ;;  %vm1341_vm13 = vcmask (!%p241_p9), 523264   ;;  %vm1417_vm14 = vcmask (!%p241_p9), 588800   ;;  %vm3465_vm15 = vmmov (!%p241_p9), 0  }
  0x13   : > { %3202 = vmatprep.subr.bf16.mxu0 (!%p241_p9), %v3366_v38 }
  0x15   : > { %s273_s15 = scalar_select %p272_p10, %s3528_s28, 1 }
  0x16   : > { %3203 = vmatpush3.bf16.msra.mxu0 %v3366_v38 }
  0x17   : > { %s3148_s16 = sshll.u32 %s273_s15, 7  ;;  %3204 = vmatprep.subr.bf16.mxu0 %v3367_v43  ;;  %s4828_s15 = scalar_lea.hbm %s4878_s7, %s3145_s17 }
  0x18   : > { %s3567_s19 = scalar_lea.vmem %s4871_s0, %s3148_s16  ;;  %s3460_s16 = smov 40  }
  0x19   : > { %v3356_v2 = vld [vmem:[%s3567_s19 + $0x8] sm:$0xff]   ;;  %v3357_v3 = vld [vmem:[%s3567_s19] sm:$0xff]   ;;  %v3358_v8 = vld [vmem:[%s3567_s19 + $0x10] sm:$0xff]  }
  0x1a   : > { %v398_v4 = vshrl.u32 %v3356_v2, 16  ;;  %v401_v5 = vshll.u32 %v3356_v2, 16  ;;  %v391_v6 = vshrl.u32 %v3357_v3, 16  ;;  %v394_v7 = vshll.u32 %v3357_v3, 16  ;;  %v3359_v42 = vld [vmem:[%s3567_s19 + $0x18] sm:$0xff]   ;;  %3205 = vmatpush3.bf16.msra.mxu0 %v3367_v43  ;;  %v3360_v60 = vld [vmem:[%s3567_s19 + $0x20] sm:$0xff]  }
  0x1b   : > { %v405_v12 = vshrl.u32 %v3358_v8, 16  ;;  %v408_v13 = vshll.u32 %v3358_v8, 16  ;;  %v412_v51 = vshrl.u32 %v3359_v42, 16  ;;  %v415_v57 = vshll.u32 %v3359_v42, 16  ;;  %3206 = vmatprep.subr.bf16.mxu0 %v3369_v52  ;;  %v3362_v38 = vld [vmem:[%s3567_s19 + $0x30] sm:$0xff]  }
  0x1c   : > { %v400_v9 = vrot.slane %v398_v4, 7  ;;  %v393_v11 = vrot.slane %v391_v6, 7  ;;  %v419_v2 = vshrl.u32 %v3360_v60, 16  ;;  %v422_v8 = vshll.u32 %v3360_v60, 16  ;;  %v3363_v60 = vld [vmem:[%s3567_s19 + $0x38] sm:$0xff]  }
  0x1d   : > { %v407_v16 = vrot.slane %v405_v12, 7  ;;  %v414_v56 = vrot.slane %v412_v51, 7  ;;  %v433_v42 = vshrl.u32 %v3362_v38, 16 }
  0x1e   : > { %v403_v14 = vor.u32 %v401_v5, %v400_v9  ;;  %v396_v15 = vor.u32 %v394_v7, %v393_v11  ;;  %v553_v17 = vsel %vm3573_vm2, %v393_v11, 0  ;;  %v554_v23 = vsel %vm3573_vm2, %v400_v9, 0  ;;  %3207 = vmatpush3.bf16.msra.mxu0 %v3369_v52  ;;  %v3370_v5 = vld [vmem:[%s4872_s1 + $0x20] ss:$0 sps:$4 sm:$0xff]  }
  0x1f   : > { %v410_v20 = vor.u32 %v408_v13, %v407_v16  ;;  %v825_v22 = vrot.slane %v553_v17, 1  ;;  %v586_v27 = vshll.u32 %v553_v17, 16  ;;  %v828_v32 = vrot.slane %v554_v23, 1  ;;  %3304 = vmatprep.subr.msk.bf16.mxu0 %vm1450_vm5, %v3370_v5 }
  0x20   : > { %v3581_v18 = vsel %vm3573_vm2, 0, %v403_v14  ;;  %v3587_v19 = vsel %vm3573_vm2, 0, %v396_v15  ;;  %v598_v33 = vshll.u32 %v554_v23, 16  ;;  %v555_v41 = vsel %vm3573_vm2, %v407_v16, 0 }
  0x21   : > { %904 = vrot.lane.b32.xlu1 %v3581_v18, %s3458_s20  ;;  %902 = vrot.lane.b32.xlu0 %v3587_v19, %s3458_s20  ;;  %v824_v21 = vrot.slane %v3587_v19, 1  ;;  %v581_v24 = vshll.u32 %v3587_v19, 16  ;;  %v3597_v25 = vsel %vm3573_vm2, 0, %v410_v20  ;;  %v579_v26 = vshrl.u32 %v3587_v19, 16 }
  0x22   : > { %v593_v28 = vshll.u32 %v3581_v18, 16  ;;  %v827_v31 = vrot.slane %v3581_v18, 1  ;;  %v591_v35 = vshrl.u32 %v3581_v18, 16  ;;  %v605_v37 = vshll.u32 %v3597_v25, 16 }
  0x23   : > { %v583_v29 = vrot.slane %v581_v24, 1  ;;  %v826_v34 = vsel %vm821_vm3, %v824_v21, %v825_v22  ;;  %v588_v40 = vrot.slane %v586_v27, 1  ;;  %v600_v45 = vrot.slane %v598_v33, 1 }
  0x24   : > { %v595_v36 = vrot.slane %v593_v28, 1  ;;  %v829_v44 = vsel %vm821_vm3, %v827_v31, %v828_v32  ;;  %v603_v47 = vshrl.u32 %v3597_v25, 16  ;;  %v607_v48 = vrot.slane %v605_v37, 1 }
  0x25   : > { %1016 = vrot.lane.b32.xlu1 %v3597_v25, %s3459_s23  ;;  %1014 = vrot.lane.b32.xlu0 %v3581_v18, %s3459_s23  ;;  %v584_v39 = vor.u32 %v583_v29, %v579_v26  ;;  %v610_v49 = vshll.u32 %v555_v41, 16  ;;  %v417_v59 = vor.u32 %v415_v57, %v414_v56  ;;  %v830_v61 = vrot.slane %v3597_v25, 1  ;;  %v3361_v26 = vld [vmem:[%s3567_s19 + $0x28] sm:$0xff]  }
  0x26   : > { %v596_v46 = vor.u32 %v595_v36, %v591_v35  ;;  %v608_v54 = vor.u32 %v607_v48, %v603_v47  ;;  %v831_v62 = vrot.slane %v555_v41, 1  ;;  %v556_v3 = vsel %vm3573_vm2, %v414_v56, 0 }
  0x27   : > { %v589_v50 = vsel %vm569_vm4, %v584_v39, %v588_v40  ;;  %v612_v55 = vrot.slane %v610_v49, 1  ;;  %v3641_v63 = vsel %vm3573_vm2, 0, %v417_v59  ;;  %v421_v7 = vrot.slane %v419_v2, 7 }
  0x28   : > { %v601_v53 = vsel %vm569_vm4, %v596_v46, %v600_v45  ;;  %v617_v4 = vshll.u32 %v3641_v63, 16  ;;  %v832_v6 = vsel %vm821_vm3, %v830_v61, %v831_v62  ;;  %v622_v9 = vshll.u32 %v556_v3, 16 }
  0x29   : > { %871 = vrot.lane.b32.xlu1 %v826_v34, %s3456_s13  ;;  %982 = vrot.lane.b32.xlu0 %v826_v34, %s3460_s16  ;;  %v613_v58 = vsel %vm569_vm4, %v608_v54, %v612_v55  ;;  %v615_v11 = vshrl.u32 %v3641_v63, 16  ;;  %v424_v13 = vor.u32 %v422_v8, %v421_v7  ;;  %v1452_v14 = vsel %vm1450_vm5, %v3370_v5, 0 }
  0x2a   : > { %v619_v12 = vrot.slane %v617_v4, 1  ;;  %3209 = vmatpush3.bf16.msra.mxu0 %v1452_v14  ;;  %v624_v16 = vrot.slane %v622_v9, 1  ;;  %v834_v20 = vrot.slane %v556_v3, 1  ;;  %v833_v22 = vrot.slane %v3641_v63, 1 }
  0x2b   : > { %v3661_v17 = vsel %vm3573_vm2, 0, %v424_v13  ;;  %v557_v24 = vsel %vm3573_vm2, %v421_v7, 0  ;;  %v426_v31 = vshrl.u32 %v3361_v26, 16  ;;  %v429_v35 = vshll.u32 %v3361_v26, 16 }
  0x2c   : > { %v620_v15 = vor.u32 %v619_v12, %v615_v11  ;;  %v629_v23 = vshll.u32 %v3661_v17, 16  ;;  %v835_v27 = vsel %vm821_vm3, %v833_v22, %v834_v20  ;;  %v627_v28 = vshrl.u32 %v3661_v17, 16  ;;  %v3364_v12 = vld [vmem:[%s3567_s19 + $0x40] sm:$0xff]  }
  0x2d   : > { %984 = vrot.lane.b32.xlu1 %v829_v44, %s3460_s16  ;;  %760 = vrot.lane.b32.xlu0 %v589_v50, %s3457_s14  ;;  %v634_v30 = vshll.u32 %v557_v24, 16  ;;  %v428_v34 = vrot.slane %v426_v31, 7  ;;  %v836_v39 = vrot.slane %v3661_v17, 1  ;;  %v837_v40 = vrot.slane %v557_v24, 1 }
  0x2e   : > { %v625_v21 = vsel %vm569_vm4, %v620_v15, %v624_v16  ;;  %v631_v29 = vrot.slane %v629_v23, 1  ;;  %v435_v46 = vrot.slane %v433_v42, 7  ;;  %v436_v47 = vshll.u32 %v3362_v38, 16  ;;  %v3368_v38 = vld [vmem:[%s3567_s19 + $0x48] sm:$0xff]  }
  0x2f   : > { %v636_v33 = vrot.slane %v634_v30, 1  ;;  %v431_v37 = vor.u32 %v429_v35, %v428_v34  ;;  %v558_v45 = vsel %vm3573_vm2, %v428_v34, 0  ;;  %v440_v4 = vshrl.u32 %v3363_v60, 16 }
  0x30   : > { %v632_v32 = vor.u32 %v631_v29, %v627_v28  ;;  %v438_v51 = vor.u32 %v436_v47, %v435_v46  ;;  %v840_v57 = vrot.slane %v558_v45, 1  ;;  %v559_v59 = vsel %vm3573_vm2, %v435_v46, 0 }
  0x31   : > { %948 = vrot.lane.b32.xlu1 %v601_v53, %s3461_s21  ;;  %946 = vrot.lane.b32.xlu0 %v589_v50, %s3461_s21  ;;  %v3690_v41 = vsel %vm3573_vm2, 0, %v431_v37  ;;  %v646_v50 = vshll.u32 %v558_v45, 16  ;;  %v658_v3 = vshll.u32 %v559_v59, 16  ;;  %v442_v7 = vrot.slane %v440_v4, 7 }
  0x32   : > { %v637_v36 = vsel %vm569_vm4, %v632_v32, %v636_v33  ;;  %v641_v43 = vshll.u32 %v3690_v41, 16  ;;  %v639_v48 = vshrl.u32 %v3690_v41, 16  ;;  %v3705_v54 = vsel %vm3573_vm2, 0, %v438_v51 }
  0x33   : > { %v839_v56 = vrot.slane %v3690_v41, 1  ;;  %v651_v62 = vshrl.u32 %v3705_v54, 16  ;;  %v443_v8 = vshll.u32 %v3363_v60, 16  ;;  %v842_v13 = vrot.slane %v3705_v54, 1 }
  0x34   : > { %v643_v49 = vrot.slane %v641_v43, 1  ;;  %v843_v14 = vrot.slane %v559_v59, 1  ;;  %v447_v16 = vshrl.u32 %v3364_v12, 16  ;;  %v560_v22 = vsel %vm3573_vm2, %v442_v7, 0 }
  0x35   : > { %1048 = vrot.lane.b32.xlu1 %v613_v58, %s3462_s22  ;;  %1046 = vrot.lane.b32.xlu0 %v601_v53, %s3462_s22  ;;  %v841_v61 = vsel %vm821_vm3, %v839_v56, %v840_v57  ;;  %v445_v11 = vor.u32 %v443_v8, %v442_v7  ;;  %v450_v24 = vshll.u32 %v3364_v12, 16  ;;  %v670_v28 = vshll.u32 %v560_v22, 16 }
  0x36   : > { %v644_v52 = vor.u32 %v643_v49, %v639_v48  ;;  %v449_v23 = vrot.slane %v447_v16, 7  ;;  %v846_v35 = vrot.slane %v560_v22, 1 }
  0x37   : > { %v3734_v15 = vsel %vm3573_vm2, 0, %v445_v11  ;;  %v672_v31 = vrot.slane %v670_v28, 1 }
  0x38   : > { %v665_v20 = vshll.u32 %v3734_v15, 16  ;;  %v663_v26 = vshrl.u32 %v3734_v15, 16  ;;  %v452_v29 = vor.u32 %v450_v24, %v449_v23  ;;  %v845_v34 = vrot.slane %v3734_v15, 1 }
  0x39   : > { %762 = vrot.lane.b32.xlu1 %v601_v53, %s3457_s14  ;;  %1078 = vrot.lane.b32.xlu0 %v829_v44, %s3463_s29  ;;  %v648_v53 = vrot.slane %v646_v50, 1  ;;  %v561_v37 = vsel %vm3573_vm2, %v449_v23, 0  ;;  %v457_v50 = vshll.u32 %v3368_v38, 16 }
  0x3a   : > { %v3749_v32 = vsel %vm3573_vm2, 0, %v452_v29  ;;  %v682_v43 = vshll.u32 %v561_v37, 16  ;;  %v849_v59 = vrot.slane %v561_v37, 1 }
  0x3b   : > { %v649_v55 = vsel %vm569_vm4, %v644_v52, %v648_v53 }
  0x3c   : > { %v684_v48 = vrot.slane %v682_v43, 1 }
  0x3d   : > { %764 = vrot.lane.b32.xlu1 %v613_v58, %s3457_s14  ;;  %1080 = vrot.lane.b32.xlu0 %v832_v6, %s3463_s29 }
  0x41   : > { %875 = vrot.lane.b32.xlu1 %v832_v6, %s3456_s13  ;;  %873 = vrot.lane.b32.xlu0 %v829_v44, %s3456_s13  ;;  %v838_v44 = vsel %vm821_vm3, %v836_v39, %v837_v40  ;;  %v847_v39 = vsel %vm821_vm3, %v845_v34, %v846_v35  ;;  %v675_v40 = vshrl.u32 %v3749_v32, 16 }
  0x45   : > { %908 = vrot.lane.b32.xlu1 %v3641_v63, %s3458_s20  ;;  %906 = vrot.lane.b32.xlu0 %v3597_v25, %s3458_s20 }
  0x49   : > { %952 = vrot.lane.b32.xlu1 %v625_v21, %s3461_s21  ;;  %950 = vrot.lane.b32.xlu0 %v613_v58, %s3461_s21  ;;  %v653_v58 = vshll.u32 %v3705_v54, 16 }
  0x4b   : > { %v655_v2 = vrot.slane %v653_v58, 1  ;;  %v848_v58 = vrot.slane %v3749_v32, 1 }
  0x4d   : > { %988 = vrot.lane.b32.xlu1 %v835_v27, %s3460_s16  ;;  %986 = vrot.lane.b32.xlu0 %v832_v6, %s3460_s16  ;;  %v656_v5 = vor.u32 %v655_v2, %v651_v62  ;;  %v660_v6 = vrot.slane %v658_v3, 1  ;;  %v3789_v4 = vsel %vm821_vm3, %v848_v58, %v849_v59 }
  0x4f   : > { %v661_v9 = vsel %vm569_vm4, %v656_v5, %v660_v6 }
  0x51   : > { %1020 = vrot.lane.b32.xlu1 %v3661_v17, %s3459_s23  ;;  %1018 = vrot.lane.b32.xlu0 %v3641_v63, %s3459_s23 }
  0x55   : > { %1052 = vrot.lane.b32.xlu1 %v637_v36, %s3462_s22  ;;  %1050 = vrot.lane.b32.xlu0 %v625_v21, %s3462_s22 }
  0x59   : > { %766 = vrot.lane.b32.xlu1 %v625_v21, %s3457_s14  ;;  %1082 = vrot.lane.b32.xlu0 %v835_v27, %s3463_s29  ;;  %v844_v21 = vsel %vm821_vm3, %v842_v13, %v843_v14 }
  0x5d   : > { %768 = vrot.lane.b32.xlu1 %v637_v36, %s3457_s14  ;;  %1084 = vrot.lane.b32.xlu0 %v838_v44, %s3463_s29 }
  0x61   : > { %879 = vrot.lane.b32.xlu1 %v838_v44, %s3456_s13  ;;  %877 = vrot.lane.b32.xlu0 %v835_v27, %s3456_s13  ;;  %v667_v27 = vrot.slane %v665_v20, 1 }
  0x63   : > { %v668_v30 = vor.u32 %v667_v27, %v663_v26 }
  0x65   : > { %912 = vrot.lane.b32.xlu1 %v3690_v41, %s3458_s20  ;;  %910 = vrot.lane.b32.xlu0 %v3661_v17, %s3458_s20  ;;  %v673_v33 = vsel %vm569_vm4, %v668_v30, %v672_v31 }
  0x69   : > { %956 = vrot.lane.b32.xlu1 %v649_v55, %s3461_s21  ;;  %954 = vrot.lane.b32.xlu0 %v637_v36, %s3461_s21  ;;  %v677_v36 = vshll.u32 %v3749_v32, 16 }
  0x6b   : > { %v679_v42 = vrot.slane %v677_v36, 1 }
  0x6d   : > { %992 = vrot.lane.b32.xlu1 %v841_v61, %s3460_s16  ;;  %990 = vrot.lane.b32.xlu0 %v838_v44, %s3460_s16  ;;  %v454_v44 = vshrl.u32 %v3368_v38, 16  ;;  %v680_v47 = vor.u32 %v679_v42, %v675_v40  ;;  %v3372_v42 = vld [vmem:[%s3567_s19 + $0x58] sm:$0xff]  }
  0x6f   : > { %v456_v49 = vrot.slane %v454_v44, 7  ;;  %v3772_v51 = vsel %vm569_vm4, %v680_v47, %v684_v48 }
  0x71   : > { %1024 = vrot.lane.b32.xlu1 %v3705_v54, %s3459_s23  ;;  %1022 = vrot.lane.b32.xlu0 %v3690_v41, %s3459_s23  ;;  %v459_v53 = vor.u32 %v457_v50, %v456_v49  ;;  %v562_v5 = vsel %vm3573_vm2, %v456_v49, 0 }
  0x72   : > { %v694_v12 = vshll.u32 %v562_v5, 16  ;;  %v852_v34 = vrot.slane %v562_v5, 1 }
  0x73   : > { %v3783_v60 = vsel %vm3573_vm2, 0, %v459_v53 }
  0x74   : > { %v689_v2 = vshll.u32 %v3783_v60, 16  ;;  %v696_v24 = vrot.slane %v694_v12, 1 }
  0x75   : > { %1056 = vrot.lane.b32.xlu1 %v661_v9, %s3462_s22  ;;  %1054 = vrot.lane.b32.xlu0 %v649_v55, %s3462_s22 }
  0x76   : > { %v691_v11 = vrot.slane %v689_v2, 1  ;;  %v471_v2 = vshll.u32 %v3372_v42, 16 }
  0x79   : > { %770 = vrot.lane.b32.xlu1 %v649_v55, %s3457_s14  ;;  %1086 = vrot.lane.b32.xlu0 %v841_v61, %s3463_s29  ;;  %v3371_v55 = vld [vmem:[%s3567_s19 + $0x50] sm:$0xff]  }
  0x7a   : > { %v464_v7 = vshll.u32 %v3371_v55, 16 }
  0x7d   : > { %772 = vrot.lane.b32.xlu1 %v661_v9, %s3457_s14  ;;  %1088 = vrot.lane.b32.xlu0 %v844_v21, %s3463_s29 }
  0x81   : > { %883 = vrot.lane.b32.xlu1 %v844_v21, %s3456_s13  ;;  %881 = vrot.lane.b32.xlu0 %v841_v61, %s3456_s13  ;;  %v461_v61 = vshrl.u32 %v3371_v55, 16 }
  0x82   : > { %v870_v45 = vpop.permute.xlu1 %869  ;;  %v759_v46 = vpop.permute.xlu0 %758 }
  0x83   : > { %v463_v6 = vrot.slane %v461_v61, 7  ;;  %v1112_v16 = vsel %vm1110_vm6, 0, %v759_v46 }
  0x84   : > { %v3806_v26 = vsel %vm1143_vm7, %v1112_v16, %v870_v45 }
  0x85   : > { %916 = vrot.lane.b32.xlu1 %v3734_v15, %s3458_s20  ;;  %914 = vrot.lane.b32.xlu0 %v3705_v54, %s3458_s20  ;;  %v466_v14 = vor.u32 %v464_v7, %v463_v6  ;;  %v563_v40 = vsel %vm3573_vm2, %v463_v6, 0 }
  0x86   : > { %v706_v49 = vshll.u32 %v563_v40, 16 }
  0x87   : > { %v3810_v28 = vsel %vm3573_vm2, 0, %v466_v14 }
  0x88   : > { %v701_v37 = vshll.u32 %v3810_v28, 16  ;;  %v699_v47 = vshrl.u32 %v3810_v28, 16  ;;  %v708_v59 = vrot.slane %v706_v49, 1  ;;  %v854_v12 = vrot.slane %v3810_v28, 1 }
  0x89   : > { %960 = vrot.lane.b32.xlu1 %v673_v33, %s3461_s21  ;;  %958 = vrot.lane.b32.xlu0 %v661_v9, %s3461_s21  ;;  %v687_v9 = vshrl.u32 %v3783_v60, 16 }
  0x8a   : > { %v703_v48 = vrot.slane %v701_v37, 1 }
  0x8b   : > { %v692_v23 = vor.u32 %v691_v11, %v687_v9 }
  0x8d   : > { %996 = vrot.lane.b32.xlu1 %v847_v39, %s3460_s16  ;;  %994 = vrot.lane.b32.xlu0 %v844_v21, %s3460_s16  ;;  %v697_v36 = vsel %vm569_vm4, %v692_v23, %v696_v24 }
  0x91   : > { %1028 = vrot.lane.b32.xlu1 %v3749_v32, %s3459_s23  ;;  %1026 = vrot.lane.b32.xlu0 %v3734_v15, %s3459_s23 }
  0x93   : > { %v905_v52 = vpop.permute.xlu1 %904  ;;  %v903_v56 = vpop.permute.xlu0 %902 }
  0x95   : > { %1060 = vrot.lane.b32.xlu1 %v3772_v51, %s3462_s22  ;;  %1058 = vrot.lane.b32.xlu0 %v673_v33, %s3462_s22 }
  0x97   : > { %v3778_v57 = vpop.permute.xlu1 %1016  ;;  %v1015_v62 = vpop.permute.xlu0 %1014 }
  0x99   : > { %774 = vrot.lane.b32.xlu1 %v673_v33, %s3457_s14  ;;  %1090 = vrot.lane.b32.xlu0 %v847_v39, %s3463_s29  ;;  %v851_v33 = vrot.slane %v3783_v60, 1 }
  0x9b   : > { %v872_v3 = vpop.permute.xlu1 %871  ;;  %v983_v8 = vpop.permute.xlu0 %982  ;;  %v853_v45 = vsel %vm821_vm3, %v851_v33, %v852_v34 }
  0x9d   : > { %776 = vrot.lane.b32.xlu1 %v3772_v51, %s3457_s14  ;;  %1092 = vrot.lane.b32.xlu0 %v3789_v4, %s3463_s29 }
  0x9f   : > { %v985_v13 = vpop.permute.xlu1 %984  ;;  %v761_v20 = vpop.permute.xlu0 %760 }
  0xa0   : > { %v1114_v21 = vsel %vm1110_vm6, %v3587_v19, %v761_v20  ;;  %v1178_v19 = vsel %vm1176_vm8, %v3806_v26, %v903_v56 }
  0xa1   : > { %887 = vrot.lane.b32.xlu1 %v3789_v4, %s3456_s13  ;;  %v1147_v22 = vsel %vm1143_vm7, %v1114_v21, %v872_v3  ;;  %885 = vrot.lane.b32.xlu0 %v847_v39, %s3456_s13 }
  0xa2   : > { %v1180_v29 = vsel %vm1176_vm8, %v1147_v22, %v905_v52  ;;  %v468_v52 = vshrl.u32 %v3372_v42, 16 }
  0xa3   : > { %v949_v27 = vpop.permute.xlu1 %948  ;;  %v947_v30 = vpop.permute.xlu0 %946 }
  0xa4   : > { %v1211_v31 = vsel %vm1209_vm9, %v1178_v19, %v947_v30  ;;  %v1213_v38 = vsel %vm1209_vm9, %v1180_v29, %v949_v27 }
  0xa5   : > { %920 = vrot.lane.b32.xlu1 %v3783_v60, %s3458_s20  ;;  %v1244_v35 = vsel %vm1242_vm10, %v1211_v31, %v983_v8  ;;  %918 = vrot.lane.b32.xlu0 %v3749_v32, %s3458_s20  ;;  %v1246_v46 = vsel %vm1242_vm10, %v1213_v38, %v985_v13  ;;  %v3373_v8 = vld [vmem:[%s3567_s19 + $0x60] sm:$0xff]   ;;  %v855_v13 = vrot.slane %v563_v40, 1 }
  0xa6   : > { %v1277_v44 = vsel %vm1275_vm11, %v1244_v35, %v1015_v62  ;;  %v1279_v56 = vsel %vm1275_vm11, %v1246_v46, %v3778_v57  ;;  %v470_v62 = vrot.slane %v468_v52, 7  ;;  %v475_v16 = vshrl.u32 %v3373_v8, 16 }
  0xa7   : > { %v1049_v39 = vpop.permute.xlu1 %1048  ;;  %v1047_v43 = vpop.permute.xlu0 %1046  ;;  %v856_v23 = vsel %vm821_vm3, %v854_v12, %v855_v13  ;;  %v478_v19 = vshll.u32 %v3373_v8, 16 }
  0xa8   : > { %v1310_v53 = vsel %vm1308_vm12, %v1277_v44, %v1047_v43  ;;  %v1312_v3 = vsel %vm1308_vm12, %v1279_v56, %v1049_v39  ;;  %v473_v7 = vor.u32 %v471_v2, %v470_v62  ;;  %v564_v24 = vsel %vm3573_vm2, %v470_v62, 0 }
  0xa9   : > { %964 = vrot.lane.b32.xlu1 %v697_v36, %s3461_s21  ;;  %962 = vrot.lane.b32.xlu0 %v3772_v51, %s3461_s21  ;;  %v704_v51 = vor.u32 %v703_v48, %v699_v47  ;;  %v477_v27 = vrot.slane %v475_v16, 7  ;;  %v718_v33 = vshll.u32 %v564_v24, 16  ;;  %v858_v44 = vrot.slane %v564_v24, 1 }
  0xaa   : > { %v3857_v14 = vsel %vm3573_vm2, 0, %v473_v7 }
  0xab   : > { %v763_v50 = vpop.permute.xlu1 %762  ;;  %v1079_v55 = vpop.permute.xlu0 %1078  ;;  %v713_v21 = vshll.u32 %v3857_v14, 16  ;;  %v711_v30 = vshrl.u32 %v3857_v14, 16  ;;  %v480_v35 = vor.u32 %v478_v19, %v477_v27  ;;  %v720_v38 = vrot.slane %v718_v33, 1 }
  0xac   : > { %v1343_v58 = vsel %vm1341_vm13, %v1310_v53, %v1079_v55  ;;  %v857_v43 = vrot.slane %v3857_v14, 1  ;;  %v1116_v46 = vsel %vm1110_vm6, %v3581_v18, %v763_v50  ;;  %v565_v52 = vsel %vm3573_vm2, %v477_v27, 0  ;;  %v3374_v53 = vld [vmem:[%s3567_s19 + $0x68] sm:$0xff]  }
  0xad   : > { %1000 = vrot.lane.b32.xlu1 %v853_v45, %s3460_s16  ;;  %998 = vrot.lane.b32.xlu0 %v3789_v4, %s3460_s16  ;;  %v709_v4 = vsel %vm569_vm4, %v704_v51, %v708_v59  ;;  %v715_v31 = vrot.slane %v713_v21, 1  ;;  %v3872_v40 = vsel %vm3573_vm2, 0, %v480_v35  ;;  %v730_v2 = vshll.u32 %v565_v52, 16 }
  0xae   : > { %3210 = vmatprep.mubr.msk.bf16.mxu0 %vm1417_vm14, %v1343_v58  ;;  %v725_v47 = vshll.u32 %v3872_v40, 16  ;;  %v859_v58 = vsel %vm821_vm3, %v857_v43, %v858_v44  ;;  %v723_v59 = vshrl.u32 %v3872_v40, 16  ;;  %v485_v21 = vshll.u32 %v3374_v53, 16 }
  0xaf   : > { %v765_v61 = vpop.permute.xlu1 %764  ;;  %v1081_v5 = vpop.permute.xlu0 %1080  ;;  %v716_v37 = vor.u32 %v715_v31, %v711_v30  ;;  %v732_v13 = vrot.slane %v730_v2, 1  ;;  %v3375_v30 = vld [vmem:[%s3567_s19 + $0x70] sm:$0xff]   ;;  %v861_v35 = vrot.slane %v565_v52, 1 }
  0xb0   : > { %v1345_v57 = vsel %vm1341_vm13, %v1312_v3, %v1081_v5  ;;  %v1118_v55 = vsel %vm1110_vm6, %v3597_v25, %v765_v61  ;;  %v727_v62 = vrot.slane %v725_v47, 1  ;;  %v482_v5 = vshrl.u32 %v3374_v53, 16 }
  0xb1   : > { %1032 = vrot.lane.b32.xlu1 %v3810_v28, %s3459_s23  ;;  %1030 = vrot.lane.b32.xlu0 %v3783_v60, %s3459_s23  ;;  %v492_v47 = vshll.u32 %v3375_v30, 16 }
  0xb2   : > { %3211 = vmatmul.mubr.msk.bf16.vlgmr.msra.gmra.mrb[0].mxu0 %vm1417_vm14, %v1345_v57 }
  0xb3   : > { %v876_v6 = vpop.permute.xlu1 %875  ;;  %v874_v9 = vpop.permute.xlu0 %873 }
  0xb4   : > { %v1149_v48 = vsel %vm1143_vm7, %v1116_v46, %v874_v9  ;;  %v1151_v3 = vsel %vm1143_vm7, %v1118_v55, %v876_v6  ;;  %v728_v6 = vor.u32 %v727_v62, %v723_v59 }
  0xb5   : > { %1064 = vrot.lane.b32.xlu1 %v709_v4, %s3462_s22  ;;  %1062 = vrot.lane.b32.xlu0 %v697_v36, %s3462_s22 }
  0xb7   : > { %v909_v11 = vpop.permute.xlu1 %908  ;;  %v907_v20 = vpop.permute.xlu0 %906 }
  0xb8   : > { %v1182_v56 = vsel %vm1176_vm8, %v1149_v48, %v907_v20  ;;  %v1184_v57 = vsel %vm1176_vm8, %v1151_v3, %v909_v11  ;;  %v484_v20 = vrot.slane %v482_v5, 7 }
  0xb9   : > { %778 = vrot.lane.b32.xlu1 %v697_v36, %s3457_s14  ;;  %1094 = vrot.lane.b32.xlu0 %v853_v45, %s3463_s29 }
  0xba   : > { %v566_v44 = vsel %vm3573_vm2, %v484_v20, 0 }
  0xbb   : > { %v953_v22 = vpop.permute.xlu1 %952  ;;  %v951_v29 = vpop.permute.xlu0 %950  ;;  %v742_v52 = vshll.u32 %v566_v44, 16  ;;  %v864_v3 = vrot.slane %v566_v44, 1 }
  0xbc   : > { %v1215_v50 = vsel %vm1209_vm9, %v1182_v56, %v951_v29  ;;  %v1217_v9 = vsel %vm1209_vm9, %v1184_v57, %v953_v22  ;;  %v487_v29 = vor.u32 %v485_v21, %v484_v20 }
  0xbd   : > { %780 = vrot.lane.b32.xlu1 %v709_v4, %s3457_s14  ;;  %1096 = vrot.lane.b32.xlu0 %v856_v23, %s3463_s29 }
  0xbf   : > { %v989_v34 = vpop.permute.xlu1 %988  ;;  %v987_v36 = vpop.permute.xlu0 %986 }
  0xc0   : > { %v1248_v51 = vsel %vm1242_vm10, %v1215_v50, %v987_v36  ;;  %v1250_v12 = vsel %vm1242_vm10, %v1217_v9, %v989_v34  ;;  %v860_v34 = vrot.slane %v3872_v40, 1  ;;  %v3923_v36 = vsel %vm3573_vm2, 0, %v487_v29  ;;  %v3376_v9 = vld [vmem:[%s3567_s19 + $0x78] sm:$0xff]  }
  0xc1   : > { %891 = vrot.lane.b32.xlu1 %v856_v23, %s3456_s13  ;;  %889 = vrot.lane.b32.xlu0 %v853_v45, %s3456_s13  ;;  %v721_v45 = vsel %vm569_vm4, %v716_v37, %v720_v38  ;;  %v489_v37 = vshrl.u32 %v3375_v30, 16  ;;  %v744_v50 = vrot.slane %v742_v52, 1  ;;  %v863_v2 = vrot.slane %v3923_v36, 1 }
  0xc2   : > { %v862_v43 = vsel %vm821_vm3, %v860_v34, %v861_v35 }
  0xc3   : > { %v1021_v39 = vpop.permute.xlu1 %1020  ;;  %v1019_v42 = vpop.permute.xlu0 %1018  ;;  %v491_v46 = vrot.slane %v489_v37, 7 }
  0xc4   : > { %v1281_v25 = vsel %vm1275_vm11, %v1248_v51, %v1019_v42  ;;  %v1283_v11 = vsel %vm1275_vm11, %v1250_v12, %v1021_v39  ;;  %v737_v39 = vshll.u32 %v3923_v36, 16 }
  0xc5   : > { %924 = vrot.lane.b32.xlu1 %v3857_v14, %s3458_s20  ;;  %922 = vrot.lane.b32.xlu0 %v3810_v28, %s3458_s20  ;;  %v494_v55 = vor.u32 %v492_v47, %v491_v46 }
  0xc7   : > { %v1053_v49 = vpop.permute.xlu1 %1052  ;;  %v1051_v18 = vpop.permute.xlu0 %1050  ;;  %v3938_v59 = vsel %vm3573_vm2, 0, %v494_v55 }
  0xc8   : > { %v1314_v7 = vsel %vm1308_vm12, %v1281_v25, %v1051_v18  ;;  %v1316_v22 = vsel %vm1308_vm12, %v1283_v11, %v1053_v49  ;;  %v735_v49 = vshrl.u32 %v3923_v36, 16  ;;  %v749_v5 = vshll.u32 %v3938_v59, 16 }
  0xc9   : > { %968 = vrot.lane.b32.xlu1 %v721_v45, %s3461_s21  ;;  %966 = vrot.lane.b32.xlu0 %v709_v4, %s3461_s21  ;;  %v747_v11 = vshrl.u32 %v3938_v59, 16  ;;  %v866_v52 = vrot.slane %v3938_v59, 1 }
  0xca   : > { %v751_v20 = vrot.slane %v749_v5, 1 }
  0xcb   : > { %v3898_v61 = vpop.permute.xlu1 %766  ;;  %v1083_v8 = vpop.permute.xlu0 %1082 }
  0xcc   : > { %v1347_v4 = vsel %vm1341_vm13, %v1314_v7, %v1083_v8  ;;  %v1120_v25 = vsel %vm1110_vm6, %v3641_v63, %v3898_v61  ;;  %v567_v8 = vsel %vm3573_vm2, %v491_v46, 0 }
  0xcd   : > { %1004 = vrot.lane.b32.xlu1 %v859_v58, %s3460_s16  ;;  %1002 = vrot.lane.b32.xlu0 %v856_v23, %s3460_s16  ;;  %v733_v23 = vsel %vm569_vm4, %v728_v6, %v732_v13  ;;  %v865_v6 = vsel %vm821_vm3, %v863_v2, %v864_v3  ;;  %v754_v21 = vshll.u32 %v567_v8, 16 }
  0xce   : > { %3214 = vmatprep.mubr.msk.bf16.mxu0 %vm1417_vm14, %v1347_v4 }
  0xcf   : > { %v769_v16 = vpop.permute.xlu1 %768  ;;  %v1085_v24 = vpop.permute.xlu0 %1084  ;;  %v756_v35 = vrot.slane %v754_v21, 1 }
  0xd0   : > { %v1349_v27 = vsel %vm1341_vm13, %v1316_v22, %v1085_v24  ;;  %v1122_v4 = vsel %vm1110_vm6, %v3661_v17, %v769_v16  ;;  %v496_v24 = vshrl.u32 %v3376_v9, 16 }
  0xd1   : > { %1036 = vrot.lane.b32.xlu1 %v3872_v40, %s3459_s23  ;;  %1034 = vrot.lane.b32.xlu0 %v3857_v14, %s3459_s23 }
  0xd2   : > { %3215 = vmatmul.mubr.msk.bf16.gmra.mrb[4].mxu0 %vm1417_vm14, %v1349_v27 }
  0xd3   : > { %v880_v19 = vpop.permute.xlu1 %879  ;;  %v878_v31 = vpop.permute.xlu0 %877 }
  0xd4   : > { %v1153_v57 = vsel %vm1143_vm7, %v1120_v25, %v878_v31  ;;  %v1155_v22 = vsel %vm1143_vm7, %v1122_v4, %v880_v19  ;;  %v752_v19 = vor.u32 %v751_v20, %v747_v11 }
  0xd5   : > { %1068 = vrot.lane.b32.xlu1 %v733_v23, %s3462_s22  ;;  %1066 = vrot.lane.b32.xlu0 %v721_v45, %s3462_s22 }
  0xd7   : > { %v913_v33 = vpop.permute.xlu1 %912  ;;  %v911_v38 = vpop.permute.xlu0 %910 }
  0xd8   : > { %v1186_v12 = vsel %vm1176_vm8, %v1153_v57, %v911_v38  ;;  %v1188_v27 = vsel %vm1176_vm8, %v1155_v22, %v913_v33  ;;  %v498_v38 = vrot.slane %v496_v24, 7 }
  0xd9   : > { %782 = vrot.lane.b32.xlu1 %v721_v45, %s3457_s14  ;;  %1098 = vrot.lane.b32.xlu0 %v859_v58, %s3463_s29  ;;  %v739_v45 = vrot.slane %v737_v39, 1  ;;  %v499_v39 = vshll.u32 %v3376_v9, 16 }
  0xdb   : > { %v957_v42 = vpop.permute.xlu1 %956  ;;  %v955_v48 = vpop.permute.xlu0 %954  ;;  %v740_v18 = vor.u32 %v739_v45, %v735_v49 }
  0xdc   : > { %v1219_v61 = vsel %vm1209_vm9, %v1186_v12, %v955_v48  ;;  %v1221_v31 = vsel %vm1209_vm9, %v1188_v27, %v957_v42  ;;  %v501_v48 = vor.u32 %v499_v39, %v498_v38 }
  0xdd   : > { %784 = vrot.lane.b32.xlu1 %v733_v23, %s3457_s14  ;;  %1100 = vrot.lane.b32.xlu0 %v862_v43, %s3463_s29 }
  0xde   : > { %v552_v55 = vsel %vm3573_vm2, 0, %v501_v48 }
  0xdf   : > { %v993_v53 = vpop.permute.xlu1 %992  ;;  %v991_v56 = vpop.permute.xlu0 %990  ;;  %v935_v3 = vshrl.u32 %v552_v55, 16 }
  0xe0   : > { %v1252_v13 = vsel %vm1242_vm10, %v1219_v61, %v991_v56  ;;  %v979_v61 = vrot.slane %v552_v55, 1 }
  0xe1   : > { %895 = vrot.lane.b32.xlu1 %v862_v43, %s3456_s13  ;;  %893 = vrot.lane.b32.xlu0 %v859_v58, %s3456_s13  ;;  %v745_v58 = vsel %vm569_vm4, %v740_v18, %v744_v50  ;;  %v937_v18 = vshll.u32 %v552_v55, 16 }
  0xe3   : > { %v1025_v51 = vpop.permute.xlu1 %1024  ;;  %v1023_v62 = vpop.permute.xlu0 %1022  ;;  %v939_v25 = vrot.slane %v937_v18, 1 }
  0xe4   : > { %v1285_v17 = vsel %vm1275_vm11, %v1252_v13, %v1023_v62  ;;  %v568_v62 = vsel %vm3573_vm2, %v498_v38, 0 }
  0xe5   : > { %928 = vrot.lane.b32.xlu1 %v3923_v36, %s3458_s20  ;;  %926 = vrot.lane.b32.xlu0 %v3872_v40, %s3458_s20  ;;  %v942_v5 = vshll.u32 %v568_v62, 16  ;;  %v980_v13 = vrot.slane %v568_v62, 1 }
  0xe7   : > { %v1057_v7 = vpop.permute.xlu1 %1056  ;;  %v1055_v63 = vpop.permute.xlu0 %1054 }
  0xe8   : > { %v1318_v29 = vsel %vm1308_vm12, %v1285_v17, %v1055_v63 }
  0xe9   : > { %972 = vrot.lane.b32.xlu1 %v745_v58, %s3461_s21  ;;  %970 = vrot.lane.b32.xlu0 %v733_v23, %s3461_s21  ;;  %v1254_v23 = vsel %vm1242_vm10, %v1221_v31, %v993_v53  ;;  %v867_v53 = vrot.slane %v567_v8, 1  ;;  %v944_v8 = vrot.slane %v942_v5, 1 }
  0xea   : > { %v1287_v37 = vsel %vm1275_vm11, %v1254_v23, %v1025_v51 }
  0xeb   : > { %v771_v16 = vpop.permute.xlu1 %770  ;;  %v1087_v30 = vpop.permute.xlu0 %1086  ;;  %v1320_v44 = vsel %vm1308_vm12, %v1287_v37, %v1057_v7  ;;  %v868_v51 = vsel %vm821_vm3, %v866_v52, %v867_v53 }
  0xec   : > { %v1351_v34 = vsel %vm1341_vm13, %v1318_v29, %v1087_v30  ;;  %v1124_v12 = vsel %vm1110_vm6, %v3690_v41, %v771_v16  ;;  %v981_v16 = vsel %vm821_vm3, %v979_v61, %v980_v13 }
  0xed   : > { %1008 = vrot.lane.b32.xlu1 %v865_v6, %s3460_s16  ;;  %1006 = vrot.lane.b32.xlu0 %v862_v43, %s3460_s16  ;;  %v757_v43 = vsel %vm569_vm4, %v752_v19, %v756_v35 }
  0xee   : > { %3218 = vmatprep.mubr.msk.bf16.mxu0 %vm1417_vm14, %v1351_v34 }
  0xef   : > { %v773_v33 = vpop.permute.xlu1 %772  ;;  %v1089_v42 = vpop.permute.xlu0 %1088 }
  0xf0   : > { %v1353_v46 = vsel %vm1341_vm13, %v1320_v44, %v1089_v42 }
  0xf1   : > { %1040 = vrot.lane.b32.xlu1 %v3938_v59, %s3459_s23  ;;  %1038 = vrot.lane.b32.xlu0 %v3923_v36, %s3459_s23 }
  0xf2   : > { %3219 = vmatmul.mubr.msk.bf16.gmra.mrb[8].mxu0 %vm1417_vm14, %v1353_v46 }
  0xf3   : > { %v884_v47 = vpop.permute.xlu1 %883  ;;  %v882_v49 = vpop.permute.xlu0 %881 }
  0xf4   : > { %v1157_v11 = vsel %vm1143_vm7, %v1124_v12, %v882_v49 }
  0xf5   : > { %1072 = vrot.lane.b32.xlu1 %v757_v43, %s3462_s22  ;;  %1070 = vrot.lane.b32.xlu0 %v745_v58, %s3462_s22 }
  0xf7   : > { %v917_v45 = vpop.permute.xlu1 %916  ;;  %v915_v56 = vpop.permute.xlu0 %914 }
  0xf8   : > { %v1190_v21 = vsel %vm1176_vm8, %v1157_v11, %v915_v56 }
  0xf9   : > { %786 = vrot.lane.b32.xlu1 %v745_v58, %s3457_s14  ;;  %1102 = vrot.lane.b32.xlu0 %v865_v6, %s3463_s29  ;;  %v940_v58 = vor.u32 %v939_v25, %v935_v3 }
  0xfb   : > { %v961_v50 = vpop.permute.xlu1 %960  ;;  %v959_v2 = vpop.permute.xlu0 %958  ;;  %v945_v63 = vsel %vm569_vm4, %v940_v58, %v944_v8 }
  0xfc   : > { %v1223_v17 = vsel %vm1209_vm9, %v1190_v21, %v959_v2 }
  0xfd   : > { %788 = vrot.lane.b32.xlu1 %v757_v43, %s3457_s14  ;;  %1104 = vrot.lane.b32.xlu0 %v868_v51, %s3463_s29 }
  0xff   : > { %v997_v57 = vpop.permute.xlu1 %996  ;;  %v995_v7 = vpop.permute.xlu0 %994 }
 0x100   : > { %v1256_v41 = vsel %vm1242_vm10, %v1223_v17, %v995_v7 }
 0x101   : > { %899 = vrot.lane.b32.xlu1 %v868_v51, %s3456_s13  ;;  %897 = vrot.lane.b32.xlu0 %v865_v6, %s3456_s13  ;;  %v1126_v6 = vsel %vm1110_vm6, %v3705_v54, %v773_v33 }
 0x102   : > { %v1159_v24 = vsel %vm1143_vm7, %v1126_v6, %v884_v47 }
 0x103   : > { %v1029_v9 = vpop.permute.xlu1 %1028  ;;  %v1027_v4 = vpop.permute.xlu0 %1026  ;;  %v1192_v54 = vsel %vm1176_vm8, %v1159_v24, %v917_v45 }
 0x104   : > { %v1289_v27 = vsel %vm1275_vm11, %v1256_v41, %v1027_v4  ;;  %v1225_v34 = vsel %vm1209_vm9, %v1192_v54, %v961_v50 }
 0x105   : > { %932 = vrot.lane.b32.xlu1 %v552_v55, %s3458_s20  ;;  %930 = vrot.lane.b32.xlu0 %v3938_v59, %s3458_s20  ;;  %v1258_v19 = vsel %vm1242_vm10, %v1225_v34, %v997_v57 }
 0x106   : > { %v1291_v35 = vsel %vm1275_vm11, %v1258_v19, %v1029_v9 }
 0x107   : > { %v1061_v20 = vpop.permute.xlu1 %1060  ;;  %v1059_v22 = vpop.permute.xlu0 %1058 }
 0x108   : > { %v1322_v30 = vsel %vm1308_vm12, %v1289_v27, %v1059_v22  ;;  %v1324_v33 = vsel %vm1308_vm12, %v1291_v35, %v1061_v20 }
 0x109   : > { %976 = vrot.lane.b32.xlu1 %v945_v63, %s3461_s21  ;;  %974 = vrot.lane.b32.xlu0 %v757_v43, %s3461_s21 }
 0x10b   : > { %v775_v29 = vpop.permute.xlu1 %774  ;;  %v1091_v31 = vpop.permute.xlu0 %1090 }
 0x10c   : > { %v1355_v23 = vsel %vm1341_vm13, %v1322_v30, %v1091_v31  ;;  %v1128_v53 = vsel %vm1110_vm6, %v3734_v15, %v775_v29 }
 0x10d   : > { %1012 = vrot.lane.b32.xlu1 %v981_v16, %s3460_s16  ;;  %1010 = vrot.lane.b32.xlu0 %v868_v51, %s3460_s16 }
 0x10e   : > { %3222 = vmatprep.mubr.msk.bf16.mxu0 %vm1417_vm14, %v1355_v23 }
 0x10f   : > { %v777_v37 = vpop.permute.xlu1 %776  ;;  %v1093_v38 = vpop.permute.xlu0 %1092 }
 0x110   : > { %v1357_v39 = vsel %vm1341_vm13, %v1324_v33, %v1093_v38  ;;  %v1130_v18 = vsel %vm1110_vm6, %v3749_v32, %v777_v37 }
 0x111   : > { %1044 = vrot.lane.b32.xlu1 %v3455_v0, %s3459_s23  ;;  %1042 = vrot.lane.b32.xlu0 %v552_v55, %s3459_s23 }
 0x112   : > { %3223 = vmatmul.mubr.msk.bf16.gmra.mrb[12].mxu0 %vm1417_vm14, %v1357_v39 }
 0x113   : > { %v888_v44 = vpop.permute.xlu1 %887  ;;  %v886_v42 = vpop.permute.xlu0 %885 }
 0x114   : > { %v1161_v55 = vsel %vm1143_vm7, %v1128_v53, %v886_v42  ;;  %v1163_v2 = vsel %vm1143_vm7, %v1130_v18, %v888_v44 }
 0x115   : > { %1076 = vrot.lane.b32.xlu1 %v3556_v1, %s3462_s22  ;;  %1074 = vrot.lane.b32.xlu0 %v945_v63, %s3462_s22 }
 0x117   : > { %v921_v46 = vpop.permute.xlu1 %920  ;;  %v919_v43 = vpop.permute.xlu0 %918 }
 0x118   : > { %v1194_v50 = vsel %vm1176_vm8, %v1161_v55, %v919_v43  ;;  %v1196_v15 = vsel %vm1176_vm8, %v1163_v2, %v921_v46 }
 0x119   : > { %1108 = vrot.lane.b32.xlu1 %v3556_v1, %s3463_s29  ;;  %1106 = vrot.lane.b32.xlu0 %v981_v16, %s3463_s29 }
 0x11b   : > { %v965_v47 = vpop.permute.xlu1 %964  ;;  %v963_v0 = vpop.permute.xlu0 %962 }
 0x11c   : > { %v1227_v51 = vsel %vm1209_vm9, %v1194_v50, %v963_v0  ;;  %v1229_v7 = vsel %vm1209_vm9, %v1196_v15, %v965_v47 }
 0x11f   : > { %v1001_v48 = vpop.permute.xlu1 %1000  ;;  %v999_v49 = vpop.permute.xlu0 %998 }
 0x120   : > { %v1260_v62 = vsel %vm1242_vm10, %v1227_v51, %v999_v49  ;;  %v1262_v58 = vsel %vm1242_vm10, %v1229_v7, %v1001_v48 }
 0x123   : > { %v1033_v45 = vpop.permute.xlu1 %1032  ;;  %v1031_v52 = vpop.permute.xlu0 %1030 }
 0x124   : > { %v1293_v3 = vsel %vm1275_vm11, %v1260_v62, %v1031_v52  ;;  %v1295_v8 = vsel %vm1275_vm11, %v1262_v58, %v1033_v45 }
 0x127   : > { %v1065_v56 = vpop.permute.xlu1 %1064  ;;  %v1063_v1 = vpop.permute.xlu0 %1062 }
 0x128   : > { %v1326_v5 = vsel %vm1308_vm12, %v1293_v3, %v1063_v1  ;;  %v1328_v4 = vsel %vm1308_vm12, %v1295_v8, %v1065_v56 }
 0x12b   : > { %v779_v25 = vpop.permute.xlu1 %778  ;;  %v1095_v57 = vpop.permute.xlu0 %1094 }
 0x12c   : > { %v1359_v32 = vsel %vm1341_vm13, %v1326_v5, %v1095_v57  ;;  %v1132_v24 = vsel %vm1110_vm6, %v3783_v60, %v779_v25 }
 0x12d   : > { %3226 = vmatprep.mubr.msk.bf16.mxu0 %vm1417_vm14, %v1359_v32 }
 0x12f   : > { %v781_v9 = vpop.permute.xlu1 %780  ;;  %v1097_v12 = vpop.permute.xlu0 %1096 }
 0x130   : > { %v1361_v63 = vsel %vm1341_vm13, %v1328_v4, %v1097_v12  ;;  %v1134_v54 = vsel %vm1110_vm6, %v3810_v28, %v781_v9 }
 0x131   : > { %3227 = vmatmul.mubr.msk.bf16.gmra.mrb[16].mxu0 %vm1417_vm14, %v1361_v63 }
 0x133   : > { %v892_v61 = vpop.permute.xlu1 %891  ;;  %v890_v13 = vpop.permute.xlu0 %889 }
 0x134   : > { %v1165_v27 = vsel %vm1143_vm7, %v1132_v24, %v890_v13  ;;  %v1167_v19 = vsel %vm1143_vm7, %v1134_v54, %v892_v61 }
 0x137   : > { %v925_v11 = vpop.permute.xlu1 %924  ;;  %v923_v20 = vpop.permute.xlu0 %922 }
 0x138   : > { %v1198_v30 = vsel %vm1176_vm8, %v1165_v27, %v923_v20  ;;  %v1200_v60 = vsel %vm1176_vm8, %v1167_v19, %v925_v11 }
 0x13b   : > { %v969_v6 = vpop.permute.xlu1 %968  ;;  %v967_v21 = vpop.permute.xlu0 %966 }
 0x13c   : > { %v1231_v34 = vsel %vm1209_vm9, %v1198_v30, %v967_v21  ;;  %v1233_v39 = vsel %vm1209_vm9, %v1200_v60, %v969_v6  ;;  %v4101_v30 = vld [vmem:[%s4873_s2] ss:$0 sm:$0xff] }
 0x13f   : > { %v1005_v22 = vpop.permute.xlu1 %1004  ;;  %v1003_v17 = vpop.permute.xlu0 %1002 }
 0x140   : > { %v1264_v23 = vsel %vm1242_vm10, %v1231_v34, %v1003_v17  ;;  %v1266_v44 = vsel %vm1242_vm10, %v1233_v39, %v1005_v22 }
 0x143   : > { %v1037_v41 = vpop.permute.xlu1 %1036  ;;  %v1035_v16 = vpop.permute.xlu0 %1034 }
 0x144   : > { %v1297_v35 = vsel %vm1275_vm11, %v1264_v23, %v1035_v16  ;;  %v1299_v42 = vsel %vm1275_vm11, %v1266_v44, %v1037_v41 }
 0x147   : > { %v1069_v29 = vpop.permute.xlu1 %1068  ;;  %v1067_v31 = vpop.permute.xlu0 %1066 }
 0x148   : > { %v1330_v33 = vsel %vm1308_vm12, %v1297_v35, %v1067_v31  ;;  %v1332_v43 = vsel %vm1308_vm12, %v1299_v42, %v1069_v29 }
 0x14b   : > { %v783_v37 = vpop.permute.xlu1 %782  ;;  %v1099_v38 = vpop.permute.xlu0 %1098 }
 0x14c   : > { %v1363_v28 = vsel %vm1341_vm13, %v1330_v33, %v1099_v38  ;;  %v1136_v51 = vsel %vm1110_vm6, %v3857_v14, %v783_v37 }
 0x14d   : > { %3230 = vmatprep.mubr.msk.bf16.mxu0 %vm1417_vm14, %v1363_v28 }
 0x14f   : > { %v785_v46 = vpop.permute.xlu1 %784  ;;  %v1101_v47 = vpop.permute.xlu0 %1100 }
 0x150   : > { %v1365_v0 = vsel %vm1341_vm13, %v1332_v43, %v1101_v47  ;;  %v1138_v3 = vsel %vm1110_vm6, %v3872_v40, %v785_v46 }
 0x151   : > { %3231 = vmatmul.mubr.msk.bf16.gmra.mrb[20].mxu0 %vm1417_vm14, %v1365_v0 }
 0x153   : > { %v896_v48 = vpop.permute.xlu1 %895  ;;  %v894_v49 = vpop.permute.xlu0 %893 }
 0x154   : > { %v1169_v62 = vsel %vm1143_vm7, %v1136_v51, %v894_v49  ;;  %v1171_v7 = vsel %vm1143_vm7, %v1138_v3, %v896_v48 }
 0x157   : > { %v929_v45 = vpop.permute.xlu1 %928  ;;  %v927_v52 = vpop.permute.xlu0 %926 }
 0x158   : > { %v1202_v25 = vsel %vm1176_vm8, %v1169_v62, %v927_v52  ;;  %v1204_v14 = vsel %vm1176_vm8, %v1171_v7, %v929_v45 }
 0x15b   : > { %v973_v53 = vpop.permute.xlu1 %972  ;;  %v971_v55 = vpop.permute.xlu0 %970 }
 0x15c   : > { %v1235_v5 = vsel %vm1209_vm9, %v1202_v25, %v971_v55  ;;  %v1237_v4 = vsel %vm1209_vm9, %v1204_v14, %v973_v53 }
 0x15f   : > { %v1009_v56 = vpop.permute.xlu1 %1008  ;;  %v1007_v18 = vpop.permute.xlu0 %1006 }
 0x160   : > { %v1268_v57 = vsel %vm1242_vm10, %v1235_v5, %v1007_v18  ;;  %v1270_v12 = vsel %vm1242_vm10, %v1237_v4, %v1009_v56 }
 0x163   : > { %v1041_v50 = vpop.permute.xlu1 %1040  ;;  %v1039_v1 = vpop.permute.xlu0 %1038 }
 0x164   : > { %v1301_v32 = vsel %vm1275_vm11, %v1268_v57, %v1039_v1  ;;  %v1303_v63 = vsel %vm1275_vm11, %v1270_v12, %v1041_v50 }
 0x167   : > { %v1073_v2 = vpop.permute.xlu1 %1072  ;;  %v1071_v15 = vpop.permute.xlu0 %1070 }
 0x168   : > { %v1334_v8 = vsel %vm1308_vm12, %v1301_v32, %v1071_v15  ;;  %v1336_v13 = vsel %vm1308_vm12, %v1303_v63, %v1073_v2 }
 0x16b   : > { %v787_v58 = vpop.permute.xlu1 %786  ;;  %v1103_v9 = vpop.permute.xlu0 %1102 }
 0x16c   : > { %v1367_v40 = vsel %vm1341_vm13, %v1334_v8, %v1103_v9  ;;  %v1140_v23 = vsel %vm1110_vm6, %v3923_v36, %v787_v58 }
 0x16d   : > { %3234 = vmatprep.mubr.msk.bf16.mxu0 %vm1417_vm14, %v1367_v40 }
 0x16f   : > { %v789_v61 = vpop.permute.xlu1 %788  ;;  %v1105_v11 = vpop.permute.xlu0 %1104 }
 0x170   : > { %v1369_v20 = vsel %vm1341_vm13, %v1336_v13, %v1105_v11  ;;  %v1142_v29 = vsel %vm1110_vm6, %v3938_v59, %v789_v61 }
 0x171   : > { %3235 = vmatmul.mubr.msk.bf16.gmra.mrb[24].mxu0 %vm1417_vm14, %v1369_v20 }
 0x173   : > { %v900_v6 = vpop.permute.xlu1 %899  ;;  %v898_v21 = vpop.permute.xlu0 %897 }
 0x174   : > { %v1175_v19 = vsel %vm1143_vm7, %v1142_v29, %v900_v6  ;;  %v1173_v60 = vsel %vm1143_vm7, %v1140_v23, %v898_v21 }
 0x177   : > { %v933_v22 = vpop.permute.xlu1 %932  ;;  %v931_v17 = vpop.permute.xlu0 %930 }
 0x178   : > { %v1208_v59 = vsel %vm1176_vm8, %v1175_v19, %v933_v22  ;;  %v1206_v28 = vsel %vm1176_vm8, %v1173_v60, %v931_v17 }
 0x17b   : > { %v977_v41 = vpop.permute.xlu1 %976  ;;  %v975_v16 = vpop.permute.xlu0 %974 }
 0x17c   : > { %v1241_v44 = vsel %vm1209_vm9, %v1208_v59, %v977_v41  ;;  %v1239_v43 = vsel %vm1209_vm9, %v1206_v28, %v975_v16 }
 0x17f   : > { %v1013_v24 = vpop.permute.xlu1 %1012  ;;  %v1011_v27 = vpop.permute.xlu0 %1010 }
 0x180   : > { %v1274_v47 = vsel %vm1242_vm10, %v1241_v44, %v1013_v24  ;;  %v1272_v48 = vsel %vm1242_vm10, %v1239_v43, %v1011_v27 }
 0x183   : > { %v4096_v54 = vpop.permute.xlu1 %1044  ;;  %v1043_v31 = vpop.permute.xlu0 %1042 }
 0x184   : > { %v1307_v49 = vsel %vm1275_vm11, %v1274_v47, %v4096_v54  ;;  %v1305_v53 = vsel %vm1275_vm11, %v1272_v48, %v1043_v31 }
 0x185   : > { %v3212_v34 = vpop.f32.mrb[0].mxu0 }
 0x186   : > { %v1497_v35 = vadd.f32 %v3212_v34, %v4101_v30  ;;  %v1488_v37 = vpop.f32.mrb[1].mxu0 }
 0x187   : > { %v1489_v33 = vadd.f32 %v4101_v30, %v1488_v37  ;;  %v3213_v38 = vpop.f32.mrb[2].mxu0  ;;  %v4110_v39 = vpop.permute.xlu1 %1076 }
 0x188   : > { %v1500_v36 = vadd.f32 %v3213_v38, %v4101_v30  ;;  %v1491_v42 = vpop.f32.mrb[3].mxu0  ;;  %v1075_v46 = vpop.permute.xlu0 %1074  ;;  %v1617_v45 = vmax.f32 %v1497_v35, 0.0  ;;  %v1340_v56 = vsel %vm1308_vm12, %v1307_v49, %v4110_v39 }
 0x189   : > { %v1492_v0 = vadd.f32 %v4101_v30, %v1491_v42  ;;  %v1615_v55 = vmax.f32 %v1489_v33, 0.0  ;;  %v1338_v51 = vsel %vm1308_vm12, %v1305_v53, %v1075_v46 }
 0x18a   : > { %v1618_v52 = vmax.f32 %v1500_v36, 0.0 }
 0x18b   : > { %v1616_v18 = vmax.f32 %v1492_v0, 0.0  ;;  %v4124_v50 = vpop.permute.xlu1 %1108 }
 0x18c   : > { %v1648_v1 = vpack.c.bf16 %v1618_v52, %v1617_v45  ;;  %v1107_v62 = vpop.permute.xlu0 %1106  ;;  %v1373_v2 = vsel %vm1341_vm13, %v1340_v56, %v4124_v50  ;;  %v3377_v45 = vld [vmem:[%s4874_s3] sm:$0xff]  }
 0x18d   : > { %v1647_v3 = vpack.c.bf16 %v1616_v18, %v1615_v55  ;;  %v1371_v25 = vsel %vm1341_vm13, %v1338_v51, %v1107_v62  ;;  %3242 = vmatprep.subr.bf16.mxu1 %v3377_v45 }
 0x18e   : > { %v1671_v15 = vshrl.u32 %v1648_v1, 16  ;;  %3238 = vmatprep.mubr.msk.bf16.mxu0 %vm1417_vm14, %v1371_v25  ;;  %v1674_v7 = vshll.u32 %v1648_v1, 16  ;;  %3243 = vmatpush3.bf16.msra.mxu1 %v3377_v45  ;;  %v3378_v1 = vld [vmem:[%s4874_s3 + $0x8] sm:$0xff]   ;;  %v3379_v25 = vld [vmem:[%s4874_s3 + $0x10] sm:$0xff]  }
 0x18f   : > { %v1664_v5 = vshrl.u32 %v1647_v3, 16  ;;  %3239 = vmatmul.mubr.msk.bf16.gmra.mrb[28].mxu0 %vm1417_vm14, %v1373_v2  ;;  %v1667_v58 = vshll.u32 %v1647_v3, 16  ;;  %3244 = vmatprep.subr.bf16.mxu1 %v3378_v1 }
 0x190   : > { %v1673_v57 = vrot.slane %v1671_v15, 7 }
 0x191   : > { %v1666_v32 = vrot.slane %v1664_v5, 7 }
 0x192   : > { %v1676_v14 = vor.u32 %v1674_v7, %v1673_v57  ;;  %v1824_v8 = vsel %vm3573_vm2, %v1673_v57, 0  ;;  %3245 = vmatpush3.bf16.msra.mxu1 %v3378_v1 }
 0x193   : > { %v1669_v9 = vor.u32 %v1667_v58, %v1666_v32  ;;  %v2083_v12 = vrot.slane %v1824_v8, 1  ;;  %v1823_v13 = vsel %vm3573_vm2, %v1666_v32, 0  ;;  %v1859_v17 = vshll.u32 %v1824_v8, 16  ;;  %3246 = vmatprep.subr.bf16.mxu1 %v3379_v25  ;;  %v3380_v32 = vld [vmem:[%s4874_s3 + $0x18] sm:$0xff]  }
 0x194   : > { %v4136_v4 = vsel %vm3573_vm2, 0, %v1676_v14  ;;  %v2080_v21 = vrot.slane %v1823_v13, 1  ;;  %v1847_v37 = vshll.u32 %v1823_v13, 16 }
 0x195   : > { %2157 = vrot.lane.b32.xlu1 %v4136_v4, %s3458_s20  ;;  %2267 = vrot.lane.b32.xlu0 %v4136_v4, %s3459_s23  ;;  %v2082_v40 = vrot.slane %v4136_v4, 1  ;;  %v4145_v63 = vsel %vm3573_vm2, 0, %v1669_v9  ;;  %v1854_v61 = vshll.u32 %v4136_v4, 16  ;;  %v1852_v22 = vshrl.u32 %v4136_v4, 16 }
 0x196   : > { %v2079_v20 = vrot.slane %v4145_v63, 1  ;;  %v1861_v24 = vrot.slane %v1859_v17, 1  ;;  %v1842_v29 = vshll.u32 %v4145_v63, 16  ;;  %v1840_v35 = vshrl.u32 %v4145_v63, 16  ;;  %3247 = vmatpush3.bf16.msra.mxu1 %v3379_v25 }
 0x197   : > { %v2084_v11 = vsel %vm821_vm3, %v2082_v40, %v2083_v12  ;;  %v1856_v6 = vrot.slane %v1854_v61, 1  ;;  %v1849_v46 = vrot.slane %v1847_v37, 1  ;;  %3248 = vmatprep.subr.bf16.mxu1 %v3380_v32  ;;  %v3381_v12 = vld [vmem:[%s4874_s3 + $0x20] ss:$0 sps:$4 sm:$0xff]  }
 0x198   : > { %v2081_v41 = vsel %vm821_vm3, %v2079_v20, %v2080_v21  ;;  %v1844_v31 = vrot.slane %v1842_v29, 1  ;;  %v2682_v20 = vsel %vm1450_vm5, %v3381_v12, 0 }
 0x199   : > { %2237 = vrot.lane.b32.xlu1 %v2084_v11, %s3460_s16  ;;  %2155 = vrot.lane.b32.xlu0 %v4145_v63, %s3458_s20  ;;  %v1857_v16 = vor.u32 %v1856_v6, %v1852_v22 }
 0x19a   : > { %v1845_v28 = vor.u32 %v1844_v31, %v1840_v35  ;;  %3249 = vmatpush3.bf16.msra.mxu1 %v3380_v32 }
 0x19b   : > { %v1862_v27 = vsel %vm569_vm4, %v1857_v16, %v1861_v24  ;;  %3305 = vmatprep.subr.msk.bf16.mxu1 %vm1450_vm5, %v3381_v12 }
 0x19c   : > { %v1850_v48 = vsel %vm569_vm4, %v1845_v28, %v1849_v46 }
 0x19d   : > { %2124 = vrot.lane.b32.xlu1 %v2081_v41, %s3456_s13  ;;  %2327 = vrot.lane.b32.xlu0 %v2084_v11, %s3463_s29 }
 0x19e   : > { %3251 = vmatpush3.bf16.msra.mxu1 %v2682_v20 }
 0x1a1   : > { %2201 = vrot.lane.b32.xlu1 %v1862_v27, %s3461_s21  ;;  %2126 = vrot.lane.b32.xlu0 %v2084_v11, %s3456_s13 }
 0x1a5   : > { %2021 = vrot.lane.b32.xlu1 %v1862_v27, %s3457_s14  ;;  %v3216_v34 = vpop.f32.mrb[4].mxu0  ;;  %2235 = vrot.lane.b32.xlu0 %v2081_v41, %s3460_s16 }
 0x1a6   : > { %v1513_v23 = vadd.f32 %v3216_v34, %v4101_v30  ;;  %v1504_v19 = vpop.f32.mrb[5].mxu0 }
 0x1a7   : > { %v1505_v60 = vadd.f32 %v4101_v30, %v1504_v19  ;;  %v3217_v59 = vpop.f32.mrb[6].mxu0 }
 0x1a8   : > { %v1516_v33 = vadd.f32 %v3217_v59, %v4101_v30  ;;  %v1507_v38 = vpop.f32.mrb[7].mxu0  ;;  %v1621_v36 = vmax.f32 %v1513_v23, 0.0 }
 0x1a9   : > { %v1508_v44 = vadd.f32 %v4101_v30, %v1507_v38  ;;  %2297 = vrot.lane.b32.xlu0 %v1862_v27, %s3462_s22  ;;  %v1619_v43 = vmax.f32 %v1505_v60, 0.0 }
 0x1aa   : > { %v1622_v42 = vmax.f32 %v1516_v33, 0.0 }
 0x1ab   : > { %v1620_v47 = vmax.f32 %v1508_v44, 0.0 }
 0x1ac   : > { %v1650_v0 = vpack.c.bf16 %v1622_v42, %v1621_v36 }
 0x1ad   : > { %v1649_v49 = vpack.c.bf16 %v1620_v47, %v1619_v43  ;;  %2019 = vrot.lane.b32.xlu0 %v1850_v48, %s3457_s14 }
 0x1ae   : > { %v1685_v52 = vshrl.u32 %v1650_v0, 16  ;;  %v1688_v56 = vshll.u32 %v1650_v0, 16 }
 0x1af   : > { %v1678_v53 = vshrl.u32 %v1649_v49, 16  ;;  %v1681_v62 = vshll.u32 %v1649_v49, 16 }
 0x1b0   : > { %v1687_v55 = vrot.slane %v1685_v52, 7 }
 0x1b1   : > { %v1680_v18 = vrot.slane %v1678_v53, 7  ;;  %2199 = vrot.lane.b32.xlu0 %v1850_v48, %s3461_s21 }
 0x1b2   : > { %v1690_v51 = vor.u32 %v1688_v56, %v1687_v55  ;;  %v1826_v15 = vsel %vm3573_vm2, %v1687_v55, 0 }
 0x1b3   : > { %v1683_v2 = vor.u32 %v1681_v62, %v1680_v18  ;;  %v2089_v58 = vrot.slane %v1826_v15, 1  ;;  %v1825_v14 = vsel %vm3573_vm2, %v1680_v18, 0  ;;  %v1883_v11 = vshll.u32 %v1826_v15, 16 }
 0x1b4   : > { %v4182_v3 = vsel %vm3573_vm2, 0, %v1690_v51  ;;  %v2086_v61 = vrot.slane %v1825_v14, 1  ;;  %v1871_v34 = vshll.u32 %v1825_v14, 16 }
 0x1b5   : > { %2161 = vrot.lane.b32.xlu1 %v4182_v3, %s3458_s20  ;;  %2271 = vrot.lane.b32.xlu0 %v4182_v3, %s3459_s23  ;;  %v4195_v5 = vsel %vm3573_vm2, 0, %v1683_v2  ;;  %v2088_v57 = vrot.slane %v4182_v3, 1  ;;  %v1878_v7 = vshll.u32 %v4182_v3, 16  ;;  %v1876_v13 = vshrl.u32 %v4182_v3, 16 }
 0x1b6   : > { %v2085_v9 = vrot.slane %v4195_v5, 1  ;;  %v1866_v22 = vshll.u32 %v4195_v5, 16  ;;  %v1885_v17 = vrot.slane %v1883_v11, 1  ;;  %v1864_v31 = vshrl.u32 %v4195_v5, 16 }
 0x1b7   : > { %v2090_v8 = vsel %vm821_vm3, %v2088_v57, %v2089_v58  ;;  %v1880_v40 = vrot.slane %v1878_v7, 1  ;;  %v1873_v28 = vrot.slane %v1871_v34, 1 }
 0x1b8   : > { %v2087_v6 = vsel %vm821_vm3, %v2085_v9, %v2086_v61  ;;  %v1868_v16 = vrot.slane %v1866_v22, 1 }
 0x1b9   : > { %2269 = vrot.lane.b32.xlu1 %v4195_v5, %s3459_s23  ;;  %2159 = vrot.lane.b32.xlu0 %v4195_v5, %s3458_s20  ;;  %v1881_v21 = vor.u32 %v1880_v40, %v1876_v13 }
 0x1ba   : > { %v1869_v60 = vor.u32 %v1868_v16, %v1864_v31 }
 0x1bb   : > { %v1886_v41 = vsel %vm569_vm4, %v1881_v21, %v1885_v17 }
 0x1bc   : > { %v1874_v46 = vsel %vm569_vm4, %v1869_v60, %v1873_v28 }
 0x1bd   : > { %2241 = vrot.lane.b32.xlu1 %v2090_v8, %s3460_s16  ;;  %2331 = vrot.lane.b32.xlu0 %v2090_v8, %s3463_s29 }
 0x1c1   : > { %2128 = vrot.lane.b32.xlu1 %v2087_v6, %s3456_s13  ;;  %2130 = vrot.lane.b32.xlu0 %v2090_v8, %s3456_s13 }
 0x1c5   : > { %2205 = vrot.lane.b32.xlu1 %v1886_v41, %s3461_s21  ;;  %v3220_v24 = vpop.f32.mrb[8].mxu0  ;;  %2329 = vrot.lane.b32.xlu0 %v2087_v6, %s3463_s29 }
 0x1c6   : > { %v1529_v27 = vadd.f32 %v3220_v24, %v4101_v30  ;;  %v1520_v29 = vpop.f32.mrb[9].mxu0 }
 0x1c7   : > { %v1521_v23 = vadd.f32 %v4101_v30, %v1520_v29  ;;  %v3221_v19 = vpop.f32.mrb[10].mxu0 }
 0x1c8   : > { %v1532_v35 = vadd.f32 %v3221_v19, %v4101_v30  ;;  %v1523_v37 = vpop.f32.mrb[11].mxu0  ;;  %v1625_v33 = vmax.f32 %v1529_v27, 0.0 }
 0x1c9   : > { %v1524_v59 = vadd.f32 %v4101_v30, %v1523_v37  ;;  %2025 = vrot.lane.b32.xlu1 %v1886_v41, %s3457_s14  ;;  %2239 = vrot.lane.b32.xlu0 %v2087_v6, %s3460_s16  ;;  %v1623_v44 = vmax.f32 %v1521_v23, 0.0 }
 0x1ca   : > { %v1626_v38 = vmax.f32 %v1532_v35, 0.0 }
 0x1cb   : > { %v1624_v36 = vmax.f32 %v1524_v59, 0.0 }
 0x1cc   : > { %v1652_v42 = vpack.c.bf16 %v1626_v38, %v1625_v33 }
 0x1cd   : > { %v1651_v43 = vpack.c.bf16 %v1624_v36, %v1623_v44  ;;  %2299 = vrot.lane.b32.xlu1 %v1874_v46, %s3462_s22  ;;  %2301 = vrot.lane.b32.xlu0 %v1886_v41, %s3462_s22 }
 0x1ce   : > { %v1699_v47 = vshrl.u32 %v1652_v42, 16  ;;  %v1702_v49 = vshll.u32 %v1652_v42, 16 }
 0x1cf   : > { %v1692_v0 = vshrl.u32 %v1651_v43, 16  ;;  %v1695_v53 = vshll.u32 %v1651_v43, 16 }
 0x1d0   : > { %v1701_v48 = vrot.slane %v1699_v47, 7 }
 0x1d1   : > { %v1694_v45 = vrot.slane %v1692_v0, 7  ;;  %2023 = vrot.lane.b32.xlu1 %v1874_v46, %s3457_s14  ;;  %2203 = vrot.lane.b32.xlu0 %v1874_v46, %s3461_s21 }
 0x1d2   : > { %v1704_v52 = vor.u32 %v1702_v49, %v1701_v48  ;;  %v1828_v18 = vsel %vm3573_vm2, %v1701_v48, 0 }
 0x1d3   : > { %v1697_v55 = vor.u32 %v1695_v53, %v1694_v45  ;;  %v2095_v2 = vrot.slane %v1828_v18, 1  ;;  %v1827_v25 = vsel %vm3573_vm2, %v1694_v45, 0  ;;  %v1907_v14 = vshll.u32 %v1828_v18, 16 }
 0x1d4   : > { %v4239_v56 = vsel %vm3573_vm2, 0, %v1704_v52  ;;  %v2092_v32 = vrot.slane %v1827_v25, 1  ;;  %v1895_v22 = vshll.u32 %v1827_v25, 16 }
 0x1d5   : > { %2165 = vrot.lane.b32.xlu1 %v4239_v56, %s3458_s20  ;;  %2275 = vrot.lane.b32.xlu0 %v4239_v56, %s3459_s23  ;;  %v4249_v1 = vsel %vm3573_vm2, 0, %v1697_v55  ;;  %v2094_v51 = vrot.slane %v4239_v56, 1  ;;  %v1902_v62 = vshll.u32 %v4239_v56, 16  ;;  %v1900_v58 = vshrl.u32 %v4239_v56, 16 }
 0x1d6   : > { %v2091_v57 = vrot.slane %v4249_v1, 1  ;;  %v1890_v40 = vshll.u32 %v4249_v1, 16  ;;  %v1909_v12 = vrot.slane %v1907_v14, 1  ;;  %v1888_v21 = vshrl.u32 %v4249_v1, 16 }
 0x1d7   : > { %v2096_v15 = vsel %vm821_vm3, %v2094_v51, %v2095_v2  ;;  %v1904_v7 = vrot.slane %v1902_v62, 1  ;;  %v1897_v23 = vrot.slane %v1895_v22, 1 }
 0x1d8   : > { %v2093_v8 = vsel %vm821_vm3, %v2091_v57, %v2092_v32  ;;  %v1892_v13 = vrot.slane %v1890_v40, 1 }
 0x1d9   : > { %2273 = vrot.lane.b32.xlu1 %v4249_v1, %s3459_s23  ;;  %2163 = vrot.lane.b32.xlu0 %v4249_v1, %s3458_s20  ;;  %v1905_v9 = vor.u32 %v1904_v7, %v1900_v58 }
 0x1da   : > { %v1893_v27 = vor.u32 %v1892_v13, %v1888_v21 }
 0x1db   : > { %v1910_v61 = vsel %vm569_vm4, %v1905_v9, %v1909_v12 }
 0x1dc   : > { %v1898_v60 = vsel %vm569_vm4, %v1893_v27, %v1897_v23 }
 0x1dd   : > { %2245 = vrot.lane.b32.xlu1 %v2096_v15, %s3460_s16  ;;  %2335 = vrot.lane.b32.xlu0 %v2096_v15, %s3463_s29 }
 0x1e1   : > { %2132 = vrot.lane.b32.xlu1 %v2093_v8, %s3456_s13  ;;  %2134 = vrot.lane.b32.xlu0 %v2096_v15, %s3456_s13 }
 0x1e5   : > { %2209 = vrot.lane.b32.xlu1 %v1910_v61, %s3461_s21  ;;  %v3224_v11 = vpop.f32.mrb[12].mxu0  ;;  %2333 = vrot.lane.b32.xlu0 %v2093_v8, %s3463_s29 }
 0x1e6   : > { %v1545_v20 = vadd.f32 %v3224_v11, %v4101_v30  ;;  %v1536_v6 = vpop.f32.mrb[13].mxu0 }
 0x1e7   : > { %v1537_v17 = vadd.f32 %v4101_v30, %v1536_v6  ;;  %v3225_v41 = vpop.f32.mrb[14].mxu0 }
 0x1e8   : > { %v1548_v16 = vadd.f32 %v3225_v41, %v4101_v30  ;;  %v1539_v24 = vpop.f32.mrb[15].mxu0  ;;  %v1629_v31 = vmax.f32 %v1545_v20, 0.0 }
 0x1e9   : > { %v1540_v29 = vadd.f32 %v4101_v30, %v1539_v24  ;;  %2029 = vrot.lane.b32.xlu1 %v1910_v61, %s3457_s14  ;;  %2243 = vrot.lane.b32.xlu0 %v2093_v8, %s3460_s16  ;;  %v1627_v19 = vmax.f32 %v1537_v17, 0.0 }
 0x1ea   : > { %v1630_v34 = vmax.f32 %v1548_v16, 0.0 }
 0x1eb   : > { %v1628_v35 = vmax.f32 %v1540_v29, 0.0 }
 0x1ec   : > { %v1654_v37 = vpack.c.bf16 %v1630_v34, %v1629_v31 }
 0x1ed   : > { %v1653_v59 = vpack.c.bf16 %v1628_v35, %v1627_v19  ;;  %2303 = vrot.lane.b32.xlu1 %v1898_v60, %s3462_s22  ;;  %2305 = vrot.lane.b32.xlu0 %v1910_v61, %s3462_s22 }
 0x1ee   : > { %v1713_v33 = vshrl.u32 %v1654_v37, 16  ;;  %v1716_v44 = vshll.u32 %v1654_v37, 16 }
 0x1ef   : > { %v1706_v38 = vshrl.u32 %v1653_v59, 16  ;;  %v1709_v46 = vshll.u32 %v1653_v59, 16 }
 0x1f0   : > { %v1715_v28 = vrot.slane %v1713_v33, 7 }
 0x1f1   : > { %v1708_v36 = vrot.slane %v1706_v38, 7  ;;  %2027 = vrot.lane.b32.xlu1 %v1898_v60, %s3457_s14  ;;  %2207 = vrot.lane.b32.xlu0 %v1898_v60, %s3461_s21 }
 0x1f2   : > { %v1718_v42 = vor.u32 %v1716_v44, %v1715_v28  ;;  %v1830_v0 = vsel %vm3573_vm2, %v1715_v28, 0 }
 0x1f3   : > { %v1711_v43 = vor.u32 %v1709_v46, %v1708_v36  ;;  %v2101_v52 = vrot.slane %v1830_v0, 1  ;;  %v1829_v53 = vsel %vm3573_vm2, %v1708_v36, 0  ;;  %v1931_v25 = vshll.u32 %v1830_v0, 16 }
 0x1f4   : > { %v4285_v47 = vsel %vm3573_vm2, 0, %v1718_v42  ;;  %v2098_v62 = vrot.slane %v1829_v53, 1  ;;  %v1919_v61 = vshll.u32 %v1829_v53, 16 }
 0x1f5   : > { %2169 = vrot.lane.b32.xlu1 %v4285_v47, %s3458_s20  ;;  %2279 = vrot.lane.b32.xlu0 %v4285_v47, %s3459_s23  ;;  %v4295_v48 = vsel %vm3573_vm2, 0, %v1711_v43  ;;  %v2100_v49 = vrot.slane %v4285_v47, 1  ;;  %v1926_v45 = vshll.u32 %v4285_v47, 16  ;;  %v1924_v2 = vshrl.u32 %v4285_v47, 16 }
 0x1f6   : > { %v2097_v18 = vrot.slane %v4295_v48, 1  ;;  %v1914_v7 = vshll.u32 %v4295_v48, 16  ;;  %v1933_v32 = vrot.slane %v1931_v25, 1  ;;  %v1912_v12 = vshrl.u32 %v4295_v48, 16 }
 0x1f7   : > { %v2102_v55 = vsel %vm821_vm3, %v2100_v49, %v2101_v52  ;;  %v1928_v51 = vrot.slane %v1926_v45, 1  ;;  %v1921_v24 = vrot.slane %v1919_v61, 1 }
 0x1f8   : > { %v2099_v15 = vsel %vm821_vm3, %v2097_v18, %v2098_v62  ;;  %v1916_v14 = vrot.slane %v1914_v7, 1 }
 0x1f9   : > { %2277 = vrot.lane.b32.xlu1 %v4295_v48, %s3459_s23  ;;  %2167 = vrot.lane.b32.xlu0 %v4295_v48, %s3458_s20  ;;  %v1929_v57 = vor.u32 %v1928_v51, %v1924_v2 }
 0x1fa   : > { %v1917_v22 = vor.u32 %v1916_v14, %v1912_v12 }
 0x1fb   : > { %v1934_v58 = vsel %vm569_vm4, %v1929_v57, %v1933_v32 }
 0x1fc   : > { %v1922_v19 = vsel %vm569_vm4, %v1917_v22, %v1921_v24 }
 0x1fd   : > { %2249 = vrot.lane.b32.xlu1 %v2102_v55, %s3460_s16  ;;  %2339 = vrot.lane.b32.xlu0 %v2102_v55, %s3463_s29 }
 0x201   : > { %2136 = vrot.lane.b32.xlu1 %v2099_v15, %s3456_s13  ;;  %2138 = vrot.lane.b32.xlu0 %v2102_v55, %s3456_s13 }
 0x204   : > { %v3228_v8 = vpop.f32.mrb[16].mxu0 }
 0x205   : > { %2213 = vrot.lane.b32.xlu1 %v1934_v58, %s3461_s21  ;;  %2337 = vrot.lane.b32.xlu0 %v2099_v15, %s3463_s29  ;;  %v1561_v9 = vadd.f32 %v3228_v8, %v4101_v30  ;;  %v1552_v40 = vpop.f32.mrb[17].mxu0 }
 0x206   : > { %v1553_v13 = vadd.f32 %v4101_v30, %v1552_v40  ;;  %v3229_v11 = vpop.f32.mrb[18].mxu0 }
 0x207   : > { %v1564_v20 = vadd.f32 %v3229_v11, %v4101_v30  ;;  %v4321_v6 = vpop.permute.xlu0 %2267  ;;  %v1555_v21 = vpop.f32.mrb[19].mxu0  ;;  %v1633_v41 = vmax.f32 %v1561_v9, 0.0 }
 0x208   : > { %v1556_v17 = vadd.f32 %v4101_v30, %v1555_v21  ;;  %v1631_v27 = vmax.f32 %v1553_v13, 0.0  ;;  %v4326_v29 = vpop.permute.xlu1 %2157 }
 0x209   : > { %2033 = vrot.lane.b32.xlu1 %v1934_v58, %s3457_s14  ;;  %2247 = vrot.lane.b32.xlu0 %v2099_v15, %s3460_s16  ;;  %v1634_v16 = vmax.f32 %v1564_v20, 0.0 }
 0x20a   : > { %v1632_v31 = vmax.f32 %v1556_v17, 0.0 }
 0x20b   : > { %v1656_v34 = vpack.c.bf16 %v1634_v16, %v1633_v41  ;;  %v2156_v23 = vpop.permute.xlu0 %2155 }
 0x20c   : > { %v1655_v35 = vpack.c.bf16 %v1632_v31, %v1631_v27  ;;  %v4333_v44 = vpop.permute.xlu1 %2237  ;;  %v2418_v11 = vsel %vm1176_vm8, %v3806_v26, %v2156_v23 }
 0x20d   : > { %2307 = vrot.lane.b32.xlu1 %v1922_v19, %s3462_s22  ;;  %2309 = vrot.lane.b32.xlu0 %v1934_v58, %s3462_s22  ;;  %v1727_v37 = vshrl.u32 %v1656_v34, 16  ;;  %v1730_v33 = vshll.u32 %v1656_v34, 16 }
 0x20e   : > { %v1720_v60 = vshrl.u32 %v1655_v35, 16  ;;  %v1723_v42 = vshll.u32 %v1655_v35, 16 }
 0x20f   : > { %v1729_v59 = vrot.slane %v1727_v37, 7  ;;  %v4331_v38 = vpop.permute.xlu0 %2327 }
 0x210   : > { %v1722_v28 = vrot.slane %v1720_v60, 7  ;;  %v4349_v45 = vpop.permute.xlu1 %2124 }
 0x211   : > { %2031 = vrot.lane.b32.xlu1 %v1922_v19, %s3457_s14  ;;  %2211 = vrot.lane.b32.xlu0 %v1922_v19, %s3461_s21  ;;  %v1732_v36 = vor.u32 %v1730_v33, %v1729_v59  ;;  %v1832_v49 = vsel %vm3573_vm2, %v1729_v59, 0 }
 0x212   : > { %v1725_v46 = vor.u32 %v1723_v42, %v1722_v28  ;;  %v2107_v51 = vrot.slane %v1832_v49, 1  ;;  %v1831_v62 = vsel %vm3573_vm2, %v1722_v28, 0  ;;  %v1955_v14 = vshll.u32 %v1832_v49, 16 }
 0x213   : > { %v4337_v43 = vpop.permute.xlu0 %2126  ;;  %v4341_v0 = vsel %vm3573_vm2, 0, %v1732_v36  ;;  %v2104_v32 = vrot.slane %v1831_v62, 1  ;;  %v1943_v34 = vshll.u32 %v1831_v62, 16 }
 0x214   : > { %v4353_v53 = vsel %vm3573_vm2, 0, %v1725_v46  ;;  %v2106_v55 = vrot.slane %v4341_v0, 1  ;;  %v1950_v18 = vshll.u32 %v4341_v0, 16  ;;  %v4365_v7 = vpop.permute.xlu1 %2201  ;;  %v1948_v58 = vshrl.u32 %v4341_v0, 16 }
 0x215   : > { %2173 = vrot.lane.b32.xlu1 %v4341_v0, %s3458_s20  ;;  %2283 = vrot.lane.b32.xlu0 %v4341_v0, %s3459_s23  ;;  %v2103_v15 = vrot.slane %v4353_v53, 1  ;;  %v1938_v12 = vshll.u32 %v4353_v53, 16  ;;  %v1957_v61 = vrot.slane %v1955_v14, 1  ;;  %v1936_v31 = vshrl.u32 %v4353_v53, 16 }
 0x216   : > { %v2108_v25 = vsel %vm821_vm3, %v2106_v55, %v2107_v51  ;;  %v1952_v57 = vrot.slane %v1950_v18, 1 }
 0x217   : > { %v2236_v52 = vpop.permute.xlu0 %2235  ;;  %v2105_v9 = vsel %vm821_vm3, %v2103_v15, %v2104_v32  ;;  %v1940_v22 = vrot.slane %v1938_v12, 1 }
 0x218   : > { %v1953_v40 = vor.u32 %v1952_v57, %v1948_v58  ;;  %v4374_v13 = vpop.permute.xlu1 %2021 }
 0x219   : > { %2281 = vrot.lane.b32.xlu1 %v4353_v53, %s3459_s23  ;;  %2171 = vrot.lane.b32.xlu0 %v4353_v53, %s3458_s20  ;;  %v1941_v28 = vor.u32 %v1940_v22, %v1936_v31 }
 0x21a   : > { %v1958_v21 = vsel %vm569_vm4, %v1953_v40, %v1957_v61 }
 0x21b   : > { %v2298_v2 = vpop.permute.xlu0 %2297 }
 0x21d   : > { %2253 = vrot.lane.b32.xlu1 %v2108_v25, %s3460_s16  ;;  %2343 = vrot.lane.b32.xlu0 %v2108_v25, %s3463_s29 }
 0x21f   : > { %v2020_v8 = vpop.permute.xlu0 %2019 }
 0x220   : > { %v2358_v40 = vsel %vm1110_vm6, %v4145_v63, %v2020_v8 }
 0x221   : > { %2140 = vrot.lane.b32.xlu1 %v2105_v9, %s3456_s13  ;;  %2142 = vrot.lane.b32.xlu0 %v2108_v25, %s3456_s13  ;;  %v2388_v22 = vsel %vm1143_vm7, %v2358_v40, %v4349_v45 }
 0x223   : > { %v2200_v20 = vpop.permute.xlu0 %2199 }
 0x224   : > { %v2450_v17 = vsel %vm1209_vm9, %v2418_v11, %v2200_v20  ;;  %v3232_v41 = vpop.f32.mrb[20].mxu0 }
 0x225   : > { %2217 = vrot.lane.b32.xlu1 %v1958_v21, %s3461_s21  ;;  %2341 = vrot.lane.b32.xlu0 %v2105_v9, %s3463_s29  ;;  %v2482_v16 = vsel %vm1242_vm10, %v2450_v17, %v2236_v52  ;;  %v1577_v24 = vadd.f32 %v3232_v41, %v4101_v30  ;;  %v1568_v27 = vpop.f32.mrb[21].mxu0 }
 0x226   : > { %v1569_v26 = vadd.f32 %v4101_v30, %v1568_v27  ;;  %v3233_v19 = vpop.f32.mrb[22].mxu0  ;;  %v2514_v35 = vsel %vm1275_vm11, %v2482_v16, %v4321_v6  ;;  %v1945_v6 = vrot.slane %v1943_v34, 1  ;;  %v2420_v27 = vsel %vm1176_vm8, %v2388_v22, %v4326_v29 }
 0x227   : > { %v4386_v23 = vpop.permute.xlu1 %2161  ;;  %v1580_v37 = vadd.f32 %v3233_v19, %v4101_v30  ;;  %v4391_v60 = vpop.permute.xlu0 %2271  ;;  %v2545_v33 = vsel %vm1308_vm12, %v2514_v35, %v2298_v2  ;;  %v1637_v46 = vmax.f32 %v1577_v24, 0.0 }
 0x228   : > { %v1571_v59 = vpop.f32.mrb[23].mxu0  ;;  %v2576_v42 = vsel %vm1341_vm13, %v2545_v33, %v4331_v38  ;;  %v1635_v52 = vmax.f32 %v1569_v26, 0.0  ;;  %v1946_v2 = vsel %vm569_vm4, %v1941_v28, %v1945_v6 }
 0x229   : > { %v1572_v36 = vadd.f32 %v4101_v30, %v1571_v59  ;;  %2037 = vrot.lane.b32.xlu1 %v1958_v21, %s3457_s14  ;;  %2251 = vrot.lane.b32.xlu0 %v2105_v9, %s3460_s16  ;;  %v1638_v49 = vmax.f32 %v1580_v37, 0.0  ;;  %v2452_v37 = vsel %vm1209_vm9, %v2420_v27, %v4365_v7  ;;  %v2360_v7 = vsel %vm1110_vm6, %v4136_v4, %v4374_v13 }
 0x22a   : > { %3252 = vmatprep.mubr.msk.bf16.mxu1 %vm1417_vm14, %v2576_v42  ;;  %v2390_v4 = vsel %vm1143_vm7, %v2360_v7, %v4337_v43 }
 0x22b   : > { %v1636_v55 = vmax.f32 %v1572_v36, 0.0  ;;  %v2270_v18 = vpop.permute.xlu1 %2269  ;;  %v1658_v51 = vpack.c.bf16 %v1638_v49, %v1637_v46  ;;  %v4400_v62 = vpop.permute.xlu0 %2159  ;;  %v2484_v36 = vsel %vm1242_vm10, %v2452_v37, %v4333_v44 }
 0x22c   : > { %v2516_v46 = vsel %vm1275_vm11, %v2484_v36, %v2270_v18 }
 0x22d   : > { %v1657_v25 = vpack.c.bf16 %v1636_v55, %v1635_v52  ;;  %2311 = vrot.lane.b32.xlu1 %v1946_v2, %s3462_s22  ;;  %2313 = vrot.lane.b32.xlu0 %v1958_v21, %s3462_s22  ;;  %v1741_v15 = vshrl.u32 %v1658_v51, 16  ;;  %v1744_v12 = vshll.u32 %v1658_v51, 16 }
 0x22f   : > { %v1734_v38 = vshrl.u32 %v1657_v25, 16  ;;  %v4405_v57 = vpop.permute.xlu1 %2241  ;;  %v4407_v32 = vpop.permute.xlu0 %2331  ;;  %v1743_v58 = vrot.slane %v1741_v15, 7  ;;  %v1737_v9 = vshll.u32 %v1657_v25, 16  ;;  %v2422_v15 = vsel %vm1176_vm8, %v2390_v4, %v4400_v62 }
 0x231   : > { %v1736_v14 = vrot.slane %v1734_v38, 7  ;;  %2035 = vrot.lane.b32.xlu1 %v1946_v2, %s3457_s14  ;;  %2215 = vrot.lane.b32.xlu0 %v1946_v2, %s3461_s21  ;;  %v1746_v17 = vor.u32 %v1744_v12, %v1743_v58  ;;  %v1834_v6 = vsel %vm3573_vm2, %v1743_v58, 0 }
 0x232   : > { %v1979_v25 = vshll.u32 %v1834_v6, 16 }
 0x233   : > { %v1739_v61 = vor.u32 %v1737_v9, %v1736_v14  ;;  %v1833_v11 = vsel %vm3573_vm2, %v1736_v14, 0  ;;  %v4415_v20 = vpop.permute.xlu1 %2128  ;;  %v4417_v21 = vpop.permute.xlu0 %2130  ;;  %v4437_v26 = vsel %vm3573_vm2, 0, %v1746_v17 }
 0x234   : > { %v2110_v8 = vrot.slane %v1833_v11, 1  ;;  %v1967_v35 = vshll.u32 %v1833_v11, 16  ;;  %v1974_v28 = vshll.u32 %v4437_v26, 16  ;;  %v1972_v18 = vshrl.u32 %v4437_v26, 16 }
 0x235   : > { %v4423_v41 = vsel %vm3573_vm2, 0, %v1739_v61  ;;  %v1981_v17 = vrot.slane %v1979_v25, 1 }
 0x236   : > { %2285 = vrot.lane.b32.xlu1 %v4423_v41, %s3459_s23  ;;  %v2109_v63 = vrot.slane %v4423_v41, 1  ;;  %v1962_v16 = vshll.u32 %v4423_v41, 16  ;;  %v1960_v19 = vshrl.u32 %v4423_v41, 16  ;;  %v1969_v42 = vrot.slane %v1967_v35, 1 }
 0x237   : > { %v4429_v24 = vpop.permute.xlu1 %2205  ;;  %v2330_v31 = vpop.permute.xlu0 %2329  ;;  %v1976_v2 = vrot.slane %v1974_v28, 1 }
 0x238   : > { %v2111_v45 = vsel %vm821_vm3, %v2109_v63, %v2110_v8  ;;  %v1964_v34 = vrot.slane %v1962_v16, 1 }
 0x239   : > { %2345 = vrot.lane.b32.xlu0 %v2111_v45, %s3463_s29  ;;  %v1977_v9 = vor.u32 %v1976_v2, %v1972_v18 }
 0x23a   : > { %2177 = vrot.lane.b32.xlu1 %v4437_v26, %s3458_s20  ;;  %v1965_v33 = vor.u32 %v1964_v34, %v1960_v19  ;;  %v2112_v34 = vrot.slane %v4437_v26, 1 }
 0x23b   : > { %v4444_v29 = vpop.permute.xlu1 %2025  ;;  %v2240_v59 = vpop.permute.xlu0 %2239 }
 0x23c   : > { %v1970_v51 = vsel %vm569_vm4, %v1965_v33, %v1969_v42 }
 0x23d   : > { %2175 = vrot.lane.b32.xlu0 %v4423_v41, %s3458_s20 }
 0x23e   : > { %2144 = vrot.lane.b32.xlu1 %v2111_v45, %s3456_s13 }
 0x23f   : > { %v2300_v49 = vpop.permute.xlu1 %2299  ;;  %v2302_v55 = vpop.permute.xlu0 %2301 }
 0x240   : > { %v2547_v52 = vsel %vm1308_vm12, %v2516_v46, %v2300_v49 }
 0x241   : > { %2219 = vrot.lane.b32.xlu0 %v1970_v51, %s3461_s21  ;;  %v2578_v44 = vsel %vm1341_vm13, %v2547_v52, %v2330_v31 }
 0x242   : > { %2315 = vrot.lane.b32.xlu1 %v1970_v51, %s3462_s22  ;;  %3253 = vmatmul.mubr.msk.bf16.vlgmr.msra.gmra.mrb[0].mxu1 %vm1417_vm14, %v2578_v44 }
 0x243   : > { %v2024_v13 = vpop.permute.xlu1 %2023  ;;  %v2204_v38 = vpop.permute.xlu0 %2203 }
 0x244   : > { %v2454_v58 = vsel %vm1209_vm9, %v2422_v15, %v2204_v38  ;;  %v3236_v14 = vpop.f32.mrb[24].mxu0 }
 0x245   : > { %2255 = vrot.lane.b32.xlu0 %v2111_v45, %s3460_s16  ;;  %v2486_v40 = vsel %vm1242_vm10, %v2454_v58, %v2240_v59  ;;  %v1593_v12 = vadd.f32 %v3236_v14, %v4101_v30  ;;  %v1584_v43 = vpop.f32.mrb[25].mxu0  ;;  %v1982_v45 = vsel %vm569_vm4, %v1977_v9, %v1981_v17 }
 0x246   : > { %2039 = vrot.lane.b32.xlu1 %v1970_v51, %s3457_s14  ;;  %v2518_v61 = vsel %vm1275_vm11, %v2486_v40, %v4391_v60  ;;  %v1585_v11 = vadd.f32 %v4101_v30, %v1584_v43  ;;  %v3237_v22 = vpop.f32.mrb[26].mxu0 }
 0x247   : > { %v4477_v62 = vpop.permute.xlu1 %2165  ;;  %v1596_v63 = vadd.f32 %v3237_v22, %v4101_v30  ;;  %v4480_v8 = vpop.permute.xlu0 %2275  ;;  %v2549_v27 = vsel %vm1308_vm12, %v2518_v61, %v2302_v55  ;;  %v1641_v19 = vmax.f32 %v1593_v12, 0.0 }
 0x248   : > { %v1587_v16 = vpop.f32.mrb[27].mxu0  ;;  %v2580_v60 = vsel %vm1341_vm13, %v2549_v27, %v4407_v32  ;;  %v1639_v37 = vmax.f32 %v1585_v11, 0.0 }
 0x249   : > { %v1588_v31 = vadd.f32 %v4101_v30, %v1587_v16  ;;  %2287 = vrot.lane.b32.xlu0 %v4437_v26, %s3459_s23  ;;  %v1642_v35 = vmax.f32 %v1596_v63, 0.0  ;;  %3256 = vmatprep.mubr.msk.bf16.mxu1 %vm1417_vm14, %v2580_v60  ;;  %v2113_v30 = vrot.slane %v1834_v6, 1  ;;  %v2362_v6 = vsel %vm1110_vm6, %v4195_v5, %v2024_v13 }
 0x24a   : > { %2221 = vrot.lane.b32.xlu1 %v1982_v45, %s3461_s21  ;;  %v2392_v18 = vsel %vm1143_vm7, %v2362_v6, %v4415_v20 }
 0x24b   : > { %v1640_v59 = vmax.f32 %v1588_v31, 0.0  ;;  %v2274_v33 = vpop.permute.xlu1 %2273  ;;  %v1660_v28 = vpack.c.bf16 %v1642_v35, %v1641_v19  ;;  %v2164_v36 = vpop.permute.xlu0 %2163  ;;  %v2114_v32 = vsel %vm821_vm3, %v2112_v34, %v2113_v30  ;;  %v2424_v9 = vsel %vm1176_vm8, %v2392_v18, %v4386_v23 }
 0x24c   : > { %v2456_v63 = vsel %vm1209_vm9, %v2424_v9, %v4429_v24  ;;  %v2364_v24 = vsel %vm1110_vm6, %v4182_v3, %v4444_v29  ;;  %v3390_v29 = vld [vmem:[%s4873_s2] ss:$0 sm:$0xff] }
 0x24d   : > { %v1659_v42 = vpack.c.bf16 %v1640_v59, %v1639_v37  ;;  %2317 = vrot.lane.b32.xlu0 %v1982_v45, %s3462_s22  ;;  %v1755_v25 = vshrl.u32 %v1660_v28, 16  ;;  %v1758_v17 = vshll.u32 %v1660_v28, 16  ;;  %v2488_v60 = vsel %vm1242_vm10, %v2456_v63, %v4405_v57 }
 0x24e   : > { %2257 = vrot.lane.b32.xlu1 %v2114_v32, %s3460_s16  ;;  %v2520_v34 = vsel %vm1275_vm11, %v2488_v60, %v2274_v33  ;;  %v2394_v3 = vsel %vm1143_vm7, %v2364_v24, %v4417_v21 }
 0x24f   : > { %v1748_v46 = vshrl.u32 %v1659_v42, 16  ;;  %v4495_v49 = vpop.permute.xlu1 %2245  ;;  %v4497_v7 = vpop.permute.xlu0 %2335  ;;  %v1751_v55 = vshll.u32 %v1659_v42, 16  ;;  %v1757_v61 = vrot.slane %v1755_v25, 7  ;;  %v2426_v42 = vsel %vm1176_vm8, %v2394_v3, %v2164_v36 }
 0x251   : > { %v1750_v52 = vrot.slane %v1748_v46, 7  ;;  %2347 = vrot.lane.b32.xlu0 %v2114_v32, %s3463_s29  ;;  %v1760_v31 = vor.u32 %v1758_v17, %v1757_v61  ;;  %v1836_v25 = vsel %vm3573_vm2, %v1757_v61, 0 }
 0x252   : > { %v2003_v17 = vshll.u32 %v1836_v25, 16 }
 0x253   : > { %v1753_v51 = vor.u32 %v1751_v55, %v1750_v52  ;;  %v1835_v44 = vsel %vm3573_vm2, %v1750_v52, 0  ;;  %v4504_v2 = vpop.permute.xlu1 %2132  ;;  %v4506_v4 = vpop.permute.xlu0 %2134  ;;  %v4545_v57 = vsel %vm3573_vm2, 0, %v1760_v31 }
 0x254   : > { %v2116_v13 = vrot.slane %v1835_v44, 1  ;;  %v1991_v58 = vshll.u32 %v1835_v44, 16  ;;  %v1998_v55 = vshll.u32 %v4545_v57, 16 }
 0x255   : > { %v4512_v15 = vsel %vm3573_vm2, 0, %v1753_v51 }
 0x256   : > { %2289 = vrot.lane.b32.xlu1 %v4512_v15, %s3459_s23  ;;  %v2115_v5 = vrot.slane %v4512_v15, 1  ;;  %v1986_v38 = vshll.u32 %v4512_v15, 16  ;;  %v1984_v12 = vshrl.u32 %v4512_v15, 16  ;;  %v1993_v22 = vrot.slane %v1991_v58, 1 }
 0x257   : > { %v4518_v14 = vpop.permute.xlu1 %2209  ;;  %v2334_v20 = vpop.permute.xlu0 %2333 }
 0x258   : > { %v2117_v40 = vsel %vm821_vm3, %v2115_v5, %v2116_v13  ;;  %v1988_v43 = vrot.slane %v1986_v38, 1 }
 0x259   : > { %2349 = vrot.lane.b32.xlu0 %v2117_v40, %s3463_s29 }
 0x25a   : > { %v1989_v11 = vor.u32 %v1988_v43, %v1984_v12  ;;  %v2000_v43 = vrot.slane %v1998_v55, 1 }
 0x25b   : > { %v4527_v16 = vpop.permute.xlu1 %2029  ;;  %v2244_v27 = vpop.permute.xlu0 %2243 }
 0x25c   : > { %v1994_v23 = vsel %vm569_vm4, %v1989_v11, %v1993_v22 }
 0x25d   : > { %2319 = vrot.lane.b32.xlu1 %v1994_v23, %s3462_s22  ;;  %2146 = vrot.lane.b32.xlu0 %v2114_v32, %s3456_s13 }
 0x25f   : > { %v2304_v19 = vpop.permute.xlu1 %2303  ;;  %v2306_v37 = vpop.permute.xlu0 %2305 }
 0x260   : > { %v2551_v35 = vsel %vm1308_vm12, %v2520_v34, %v2304_v19  ;;  %v2005_v34 = vrot.slane %v2003_v17, 1 }
 0x261   : > { %2041 = vrot.lane.b32.xlu1 %v1982_v45, %s3457_s14  ;;  %2179 = vrot.lane.b32.xlu0 %v4512_v15, %s3458_s20  ;;  %v2582_v59 = vsel %vm1341_vm13, %v2551_v35, %v2334_v20 }
 0x262   : > { %v3240_v33 = vpop.f32.mrb[28].mxu0  ;;  %3257 = vmatmul.mubr.msk.bf16.gmra.mrb[4].mxu1 %vm1417_vm14, %v2582_v59 }
 0x263   : > { %v1609_v45 = vadd.f32 %v3390_v29, %v3240_v33  ;;  %v2028_v30 = vpop.permute.xlu1 %2027  ;;  %v1600_v28 = vpop.f32.mrb[29].mxu0  ;;  %v2119_v33 = vrot.slane %v1836_v25, 1 }
 0x264   : > { %v1601_v32 = vadd.f32 %v3390_v29, %v1600_v28  ;;  %v2208_v46 = vpop.permute.xlu0 %2207  ;;  %v3241_v52 = vpop.f32.mrb[30].mxu0  ;;  %v2366_v59 = vsel %vm1110_vm6, %v4249_v1, %v2028_v30 }
 0x265   : > { %v2458_v6 = vsel %vm1209_vm9, %v2426_v42, %v2208_v46  ;;  %v1612_v51 = vadd.f32 %v3390_v29, %v3241_v52  ;;  %2043 = vrot.lane.b32.xlu1 %v1994_v23, %s3457_s14  ;;  %v1603_v21 = vpop.f32.mrb[31].mxu0  ;;  %2223 = vrot.lane.b32.xlu0 %v1994_v23, %s3461_s21  ;;  %v1645_v36 = vmax.f32 %v1609_v45, 0.0  ;;  %v2396_v1 = vsel %vm1143_vm7, %v2366_v59, %v4504_v2 }
 0x266   : > { %v2490_v44 = vsel %vm1242_vm10, %v2458_v6, %v2244_v27  ;;  %v1604_v18 = vadd.f32 %v3390_v29, %v1603_v21  ;;  %v1643_v58 = vmax.f32 %v1601_v32, 0.0 }
 0x267   : > { %v2522_v5 = vsel %vm1275_vm11, %v2490_v44, %v4480_v8  ;;  %v1646_v13 = vmax.f32 %v1612_v51, 0.0  ;;  %v4563_v38 = vpop.permute.xlu1 %2169  ;;  %v1996_v8 = vshrl.u32 %v4545_v57, 16  ;;  %v2428_v44 = vsel %vm1176_vm8, %v2396_v1, %v4477_v62 }
 0x268   : > { %v1644_v9 = vmax.f32 %v1604_v18, 0.0  ;;  %v4565_v20 = vpop.permute.xlu0 %2279  ;;  %v2553_v12 = vsel %vm1308_vm12, %v2522_v5, %v2306_v37  ;;  %v2118_v37 = vrot.slane %v4545_v57, 1 }
 0x269   : > { %v1662_v11 = vpack.c.bf16 %v1646_v13, %v1645_v36  ;;  %2148 = vrot.lane.b32.xlu1 %v2117_v40, %s3456_s13  ;;  %2259 = vrot.lane.b32.xlu0 %v2117_v40, %s3460_s16  ;;  %v2584_v61 = vsel %vm1341_vm13, %v2553_v12, %v4497_v7  ;;  %v2001_v31 = vor.u32 %v2000_v43, %v1996_v8 }
 0x26a   : > { %v1661_v22 = vpack.c.bf16 %v1644_v9, %v1643_v58  ;;  %3260 = vmatprep.mubr.msk.bf16.mxu1 %vm1417_vm14, %v2584_v61  ;;  %v2120_v32 = vsel %vm821_vm3, %v2118_v37, %v2119_v33  ;;  %v2460_v58 = vsel %vm1209_vm9, %v2428_v44, %v4518_v14  ;;  %v2368_v14 = vsel %vm1110_vm6, %v4239_v56, %v4527_v16 }
 0x26b   : > { %v2278_v63 = vpop.permute.xlu1 %2277  ;;  %v2006_v35 = vsel %vm569_vm4, %v2001_v31, %v2005_v34  ;;  %v1769_v30 = vshrl.u32 %v1662_v11, 16  ;;  %v1772_v13 = vshll.u32 %v1662_v11, 16  ;;  %v2492_v61 = vsel %vm1242_vm10, %v2460_v58, %v4495_v49 }
 0x26c   : > { %v1762_v27 = vshrl.u32 %v1661_v22, 16  ;;  %v2168_v23 = vpop.permute.xlu0 %2167  ;;  %v1765_v60 = vshll.u32 %v1661_v22, 16  ;;  %v2524_v22 = vsel %vm1275_vm11, %v2492_v61, %v2278_v63  ;;  %v2398_v63 = vsel %vm1143_vm7, %v2368_v14, %v4506_v4 }
 0x26d   : > { %2181 = vrot.lane.b32.xlu1 %v4545_v57, %s3458_s20  ;;  %2291 = vrot.lane.b32.xlu0 %v4545_v57, %s3459_s23  ;;  %v1771_v2 = vrot.slane %v1769_v30, 7  ;;  %v2430_v56 = vsel %vm1176_vm8, %v2398_v63, %v2168_v23 }
 0x26e   : > { %v1764_v40 = vrot.slane %v1762_v27, 7 }
 0x26f   : > { %v4578_v7 = vpop.permute.xlu1 %2249  ;;  %v1774_v43 = vor.u32 %v1772_v13, %v1771_v2 }
 0x270   : > { %v1767_v19 = vor.u32 %v1765_v60, %v1764_v40  ;;  %v4580_v24 = vpop.permute.xlu0 %2339  ;;  %v1837_v29 = vsel %vm3573_vm2, %v1764_v40, 0 }
 0x271   : > { %2225 = vrot.lane.b32.xlu1 %v2006_v35, %s3461_s21  ;;  %2321 = vrot.lane.b32.xlu0 %v2006_v35, %s3462_s22  ;;  %v2122_v55 = vrot.slane %v1837_v29, 1  ;;  %v2015_v51 = vshll.u32 %v1837_v29, 16  ;;  %v1822_v49 = vsel %vm3573_vm2, 0, %v1774_v43 }
 0x272   : > { %v4590_v3 = vsel %vm3573_vm2, 0, %v1767_v19  ;;  %v2190_v40 = vshll.u32 %v1822_v49, 16  ;;  %v1838_v19 = vsel %vm3573_vm2, %v1771_v2, 0  ;;  %v2188_v29 = vshrl.u32 %v1822_v49, 16 }
 0x273   : > { %v4594_v45 = vpop.permute.xlu1 %2136  ;;  %v2010_v28 = vshll.u32 %v4590_v3, 16  ;;  %v2121_v46 = vrot.slane %v4590_v3, 1  ;;  %v2008_v6 = vshrl.u32 %v4590_v3, 16  ;;  %v2017_v5 = vrot.slane %v2015_v51, 1 }
 0x274   : > { %v4597_v42 = vpop.permute.xlu0 %2138  ;;  %v2192_v59 = vrot.slane %v2190_v40, 1  ;;  %v2195_v10 = vshll.u32 %v1838_v19, 16  ;;  %v2233_v30 = vrot.slane %v1838_v19, 1 }
 0x275   : > { %2261 = vrot.lane.b32.xlu1 %v2120_v32, %s3460_s16  ;;  %2351 = vrot.lane.b32.xlu0 %v2120_v32, %s3463_s29  ;;  %v2012_v52 = vrot.slane %v2010_v28, 1  ;;  %v2123_v25 = vsel %vm821_vm3, %v2121_v46, %v2122_v55 }
 0x276   : > { %v2193_v46 = vor.u32 %v2192_v59, %v2188_v29  ;;  %v2197_v1 = vrot.slane %v2195_v10, 1 }
 0x277   : > { %v4606_v21 = vpop.permute.xlu1 %2213  ;;  %v2013_v36 = vor.u32 %v2012_v52, %v2008_v6 }
 0x278   : > { %v2338_v18 = vpop.permute.xlu0 %2337  ;;  %v2198_v6 = vsel %vm569_vm4, %v2193_v46, %v2197_v1 }
 0x279   : > { %2293 = vrot.lane.b32.xlu1 %v4590_v3, %s3459_s23  ;;  %2353 = vrot.lane.b32.xlu0 %v2123_v25, %s3463_s29  ;;  %v2018_v62 = vsel %vm569_vm4, %v2013_v36, %v2017_v5 }
 0x27b   : > { %v4616_v9 = vpop.permute.xlu1 %2033 }
 0x27c   : > { %v2248_v12 = vpop.permute.xlu0 %2247  ;;  %v2372_v43 = vsel %vm1110_vm6, %v4285_v47, %v4616_v9 }
 0x27d   : > { %2323 = vrot.lane.b32.xlu1 %v2018_v62, %s3462_s22  ;;  %2150 = vrot.lane.b32.xlu0 %v2120_v32, %s3456_s13 }
 0x27f   : > { %v2308_v8 = vpop.permute.xlu1 %2307 }
 0x280   : > { %v2555_v11 = vsel %vm1308_vm12, %v2524_v22, %v2308_v8  ;;  %v2310_v17 = vpop.permute.xlu0 %2309 }
 0x281   : > { %2045 = vrot.lane.b32.xlu1 %v2006_v35, %s3457_s14  ;;  %2183 = vrot.lane.b32.xlu0 %v4590_v3, %s3458_s20  ;;  %v2586_v27 = vsel %vm1341_vm13, %v2555_v11, %v2338_v18 }
 0x282   : > { %3261 = vmatmul.mubr.msk.bf16.gmra.mrb[8].mxu1 %vm1417_vm14, %v2586_v27 }
 0x283   : > { %v2032_v31 = vpop.permute.xlu1 %2031 }
 0x284   : > { %v2212_v16 = vpop.permute.xlu0 %2211  ;;  %v2370_v51 = vsel %vm1110_vm6, %v4295_v48, %v2032_v31 }
 0x285   : > { %v2462_v60 = vsel %vm1209_vm9, %v2430_v56, %v2212_v16  ;;  %2047 = vrot.lane.b32.xlu1 %v2018_v62, %s3457_s14  ;;  %2227 = vrot.lane.b32.xlu0 %v2018_v62, %s3461_s21  ;;  %s3466_s14 = smov [#allocation2]  }
 0x286   : > { %v2494_v34 = vsel %vm1242_vm10, %v2462_v60, %v2248_v12 }
 0x287   : > { %v2526_v35 = vsel %vm1275_vm11, %v2494_v34, %v4565_v20  ;;  %v2174_v4 = vpop.permute.xlu1 %2173  ;;  %v2232_v20 = vrot.slane %v1822_v49, 1 }
 0x288   : > { %v2284_v37 = vpop.permute.xlu0 %2283  ;;  %v2557_v23 = vsel %vm1308_vm12, %v2526_v35, %v2310_v17 }
 0x289   : > { %2152 = vrot.lane.b32.xlu1 %v2123_v25, %s3456_s13  ;;  %2263 = vrot.lane.b32.xlu0 %v2123_v25, %s3460_s16  ;;  %v2588_v33 = vsel %vm1341_vm13, %v2557_v23, %v4580_v24  ;;  %v2234_v24 = vsel %vm821_vm3, %v2232_v20, %v2233_v30  ;;  %v2400_v25 = vsel %vm1143_vm7, %v2370_v51, %v4594_v45 }
 0x28a   : > { %3264 = vmatprep.mubr.msk.bf16.mxu1 %vm1417_vm14, %v2588_v33  ;;  %v2432_v2 = vsel %vm1176_vm8, %v2400_v25, %v4563_v38 }
 0x28b   : > { %v2282_v28 = vpop.permute.xlu1 %2281  ;;  %v2464_v13 = vsel %vm1209_vm9, %v2432_v2, %v4606_v21  ;;  %v2402_v21 = vsel %vm1143_vm7, %v2372_v43, %v4597_v42 }
 0x28c   : > { %v2172_v32 = vpop.permute.xlu0 %2171  ;;  %v2496_v48 = vsel %vm1242_vm10, %v2464_v13, %v4578_v7 }
 0x28d   : > { %2185 = vrot.lane.b32.xlu1 %v1822_v49, %s3458_s20  ;;  %2295 = vrot.lane.b32.xlu0 %v1822_v49, %s3459_s23  ;;  %v2528_v62 = vsel %vm1275_vm11, %v2496_v48, %v2282_v28  ;;  %v2434_v7 = vsel %vm1176_vm8, %v2402_v21, %v2172_v32  ;;  %s3395_s20 = sshll.u32 %s3466_s14, 4  ;;  %s3396_s20 = int_to_ptr.vmem [resolvable:$false] %s3395_s20 }
 0x28e   : > { %s3397_s23 = scalar_lea.vmem %s3396_s20, 64 }
 0x28f   : > { %v2254_v52 = vpop.permute.xlu1 %2253 }
 0x290   : > { %v2344_v55 = vpop.permute.xlu0 %2343 }
 0x291   : > { %2229 = vrot.lane.b32.xlu1 %v2198_v6, %s3461_s21  ;;  %2355 = vrot.lane.b32.xlu0 %v2234_v24, %s3463_s29 }
 0x293   : > { %v2141_v44 = vpop.permute.xlu1 %2140 }
 0x294   : > { %v2143_v18 = vpop.permute.xlu0 %2142 }
 0x295   : > { %2265 = vrot.lane.b32.xlu1 %v2234_v24, %s3460_s16  ;;  %s269_s16 = sand.u32 1, %s3445_s25  }
 0x296   : > { %s3073_s21 = sshll.u32 %s269_s16, 1  ;;  %s2997_s13 = scalar_lea.sflag [#allocation3], %s269_s16 }
 0x297   : > { %v2218_v36 = vpop.permute.xlu1 %2217  ;;  %s271_s18 = scalar_lea.vmem [#allocation2], %s3073_s21 }
 0x298   : > { %v2342_v5 = vpop.permute.xlu0 %2341  ;;  %s3010_s8 = sshll.u32 %s271_s18, 4  ;;  %s4830_s8 = int_to_ptr.vmem [resolvable:$true] %s3010_s8 }
 0x299   : > { %2325 = vrot.lane.b32.xlu1 %v2198_v6, %s3462_s22  ;;  %s3391_s28 = scalar_lea.vmem %s4830_s8, 32  ;;  %p3398_p0 = scmp.lt.s32.totalorder %s4830_s8, %s3396_s20 }
 0x29a   : > { %p3392_p11 = scmp.ne.s32.totalorder %s4830_s8, %s3391_s28  ;;  %p3399_p1 = scmp.lt.s32.totalorder %s3397_s23, %s3391_s28 }
 0x29b   : > { %v2038_v58 = vpop.permute.xlu1 %2037 }
 0x29c   : > { %v2252_v12 = vpop.permute.xlu0 %2251  ;;  %p3393_p12 = pnand %p3392_p11, %p3545_p5  ;;  %p3400_p2 = por %p3399_p1, %p3398_p0 }
 0x29e   : > { %p3394_p13 = pneg %p3393_p12 }
 0x29f   : > { %v2312_v45 = vpop.permute.xlu1 %2311 }
 0x2a0   : > { %v2559_v38 = vsel %vm1308_vm12, %v2528_v62, %v2312_v45  ;;  %v2314_v61 = vpop.permute.xlu0 %2313  ;;  %p3401_p3 = pnand %p3400_p2, %p3394_p13 }
 0x2a1   : > { %v2590_v22 = vsel %vm1341_vm13, %v2559_v38, %v2342_v5 }
 0x2a2   : > { %3265 = vmatmul.mubr.msk.bf16.gmra.mrb[12].mxu1 %vm1417_vm14, %v2590_v22 }
 0x2a3   : > { %v2036_v8 = vpop.permute.xlu1 %2035 }
 0x2a4   : > { %v2216_v14 = vpop.permute.xlu0 %2215  ;;  %v2374_v11 = vsel %vm1110_vm6, %v4353_v53, %v2036_v8 }
 0x2a5   : > { %v2466_v17 = vsel %vm1209_vm9, %v2434_v7, %v2216_v14  ;;  %v2404_v27 = vsel %vm1143_vm7, %v2374_v11, %v2141_v44 }
 0x2a6   : > { %v2498_v47 = vsel %vm1242_vm10, %v2466_v17, %v2252_v12  ;;  %v2436_v31 = vsel %vm1176_vm8, %v2404_v27, %v2174_v4  ;;  %v2376_v4 = vsel %vm1110_vm6, %v4341_v0, %v2038_v58 }
 0x2a7   : > { %v2530_v9 = vsel %vm1275_vm11, %v2498_v47, %v2284_v37  ;;  %v2468_v53 = vsel %vm1209_vm9, %v2436_v31, %v2218_v36  ;;  %v2406_v28 = vsel %vm1143_vm7, %v2376_v4, %v2143_v18 }
 0x2a8   : > { %v2286_v49 = vpop.permute.xlu1 %2285  ;;  %v2561_v63 = vsel %vm1308_vm12, %v2530_v9, %v2314_v61  ;;  %v2500_v34 = vsel %vm1242_vm10, %v2468_v53, %v2254_v52 }
 0x2a9   : > { %v2592_v42 = vsel %vm1341_vm13, %v2561_v63, %v2344_v55  ;;  %v2532_v35 = vsel %vm1275_vm11, %v2500_v34, %v2286_v49 }
 0x2aa   : > { %3268 = vmatprep.mubr.msk.bf16.mxu1 %vm1417_vm14, %v2592_v42 }
 0x2ab   : > { %v2346_v56 = vpop.permute.xlu0 %2345 }
 0x2ac   : > { %v2178_v16 = vpop.permute.xlu1 %2177 }
 0x2af   : > { %v2176_v40 = vpop.permute.xlu0 %2175 }
 0x2b0   : > { %v2145_v60 = vpop.permute.xlu1 %2144  ;;  %v2438_v32 = vsel %vm1176_vm8, %v2406_v28, %v2176_v40 }
 0x2b3   : > { %v2220_v19 = vpop.permute.xlu0 %2219 }
 0x2b4   : > { %v2316_v37 = vpop.permute.xlu1 %2315  ;;  %v2470_v20 = vsel %vm1209_vm9, %v2438_v32, %v2220_v19 }
 0x2b5   : > { %v2563_v23 = vsel %vm1308_vm12, %v2532_v35, %v2316_v37 }
 0x2b6   : > { %v2594_v59 = vsel %vm1341_vm13, %v2563_v23, %v2346_v56 }
 0x2b7   : > { %3269 = vmatmul.mubr.msk.bf16.gmra.mrb[16].mxu1 %vm1417_vm14, %v2594_v59  ;;  %v2256_v33 = vpop.permute.xlu0 %2255 }
 0x2b8   : > { %v2040_v29 = vpop.permute.xlu1 %2039  ;;  %v2502_v1 = vsel %vm1242_vm10, %v2470_v20, %v2256_v33 }
 0x2b9   : > { %v2378_v0 = vsel %vm1110_vm6, %v4423_v41, %v2040_v29 }
 0x2ba   : > { %v2408_v51 = vsel %vm1143_vm7, %v2378_v0, %v2145_v60 }
 0x2bb   : > { %v2288_v10 = vpop.permute.xlu0 %2287  ;;  %v2440_v18 = vsel %vm1176_vm8, %v2408_v51, %v2178_v16 }
 0x2bc   : > { %v2222_v30 = vpop.permute.xlu1 %2221  ;;  %v2534_v52 = vsel %vm1275_vm11, %v2502_v1, %v2288_v10 }
 0x2bd   : > { %v2472_v2 = vsel %vm1209_vm9, %v2440_v18, %v2222_v30 }
 0x2bf   : > { %v2318_v46 = vpop.permute.xlu0 %2317 }
 0x2c0   : > { %v2565_v55 = vsel %vm1308_vm12, %v2534_v52, %v2318_v46  ;;  %v2258_v44 = vpop.permute.xlu1 %2257 }
 0x2c1   : > { %v2504_v5 = vsel %vm1242_vm10, %v2472_v2, %v2258_v44 }
 0x2c3   : > { %v2348_v6 = vpop.permute.xlu0 %2347 }
 0x2c4   : > { %v2596_v24 = vsel %vm1341_vm13, %v2565_v55, %v2348_v6 }
 0x2c5   : > { %3272 = vmatprep.mubr.msk.bf16.mxu1 %vm1417_vm14, %v2596_v24 }
 0x2c8   : > { %v2290_v25 = vpop.permute.xlu1 %2289 }
 0x2c9   : > { %v2536_v13 = vsel %vm1275_vm11, %v2504_v5, %v2290_v25 }
 0x2cb   : > { %v2350_v36 = vpop.permute.xlu0 %2349 }
 0x2cf   : > { %v2320_v58 = vpop.permute.xlu1 %2319  ;;  %v2147_v12 = vpop.permute.xlu0 %2146 }
 0x2d0   : > { %v2567_v41 = vsel %vm1308_vm12, %v2536_v13, %v2320_v58 }
 0x2d1   : > { %v2598_v48 = vsel %vm1341_vm13, %v2567_v41, %v2350_v36 }
 0x2d2   : > { %3273 = vmatmul.mubr.msk.bf16.gmra.mrb[20].mxu1 %vm1417_vm14, %v2598_v48  ;;  %v4762_v48 = vld [vmem:[%s4875_s4] ss:$0 sm:$0xff] }
 0x2d3   : > { %v2042_v62 = vpop.permute.xlu1 %2041  ;;  %v2180_v45 = vpop.permute.xlu0 %2179 }
 0x2d4   : > { %v2380_v61 = vsel %vm1110_vm6, %v4437_v26, %v2042_v62 }
 0x2d5   : > { %v2410_v8 = vsel %vm1143_vm7, %v2380_v61, %v2147_v12 }
 0x2d6   : > { %v2442_v11 = vsel %vm1176_vm8, %v2410_v8, %v2180_v45 }
 0x2d7   : > { %v2044_v43 = vpop.permute.xlu1 %2043  ;;  %v2224_v38 = vpop.permute.xlu0 %2223 }
 0x2d8   : > { %v2474_v9 = vsel %vm1209_vm9, %v2442_v11, %v2224_v38  ;;  %v2382_v56 = vsel %vm1110_vm6, %v4512_v15, %v2044_v43 }
 0x2db   : > { %v2149_v22 = vpop.permute.xlu1 %2148  ;;  %v2260_v21 = vpop.permute.xlu0 %2259 }
 0x2dc   : > { %v2506_v27 = vsel %vm1242_vm10, %v2474_v9, %v2260_v21  ;;  %v2412_v16 = vsel %vm1143_vm7, %v2382_v56, %v2149_v22 }
 0x2df   : > { %v2182_v7 = vpop.permute.xlu1 %2181  ;;  %v2292_v14 = vpop.permute.xlu0 %2291 }
 0x2e0   : > { %v2538_v49 = vsel %vm1275_vm11, %v2506_v27, %v2292_v14  ;;  %v2444_v60 = vsel %vm1176_vm8, %v2412_v16, %v2182_v7  ;;  %v3382_v7 = vld [vmem:[%s4876_s5] sm:$0xff]   ;;  %v3464_v14 = vmov 0.0  }
 0x2e1   : > { %3284 = vmatprep.subr.bf16.mxu0 %v3464_v14  ;;  %3300 = vmatprep.mubr.msk.bf16.mxu0 %vm3465_vm15, %v3464_v14 }
 0x2e2   : > { %3285 = vmatpush3.bf16.msra.mxu0 %v3382_v7 }
 0x2e3   : > { %v2226_v17 = vpop.permute.xlu1 %2225  ;;  %v2322_v47 = vpop.permute.xlu0 %2321  ;;  %3286 = vmatprep.subr.bf16.mxu0 %v3464_v14 }
 0x2e4   : > { %v2569_v63 = vsel %vm1308_vm12, %v2538_v49, %v2322_v47  ;;  %v2476_v34 = vsel %vm1209_vm9, %v2444_v60, %v2226_v17  ;;  %v3385_v60 = vld [vmem:[%s4876_s5 + $0x18] sm:$0xff]  }
 0x2e7   : > { %v2262_v42 = vpop.permute.xlu1 %2261  ;;  %v2352_v26 = vpop.permute.xlu0 %2351 }
 0x2e8   : > { %v2600_v31 = vsel %vm1341_vm13, %v2569_v63, %v2352_v26  ;;  %v2508_v19 = vsel %vm1242_vm10, %v2476_v34, %v2262_v42 }
 0x2e9   : > { %3276 = vmatprep.mubr.msk.bf16.mxu1 %vm1417_vm14, %v2600_v31 }
 0x2eb   : > { %v2294_v53 = vpop.permute.xlu1 %2293  ;;  %v2354_v40 = vpop.permute.xlu0 %2353 }
 0x2ec   : > { %v2540_v35 = vsel %vm1275_vm11, %v2508_v19, %v2294_v53  ;;  %v3383_v53 = vld [vmem:[%s4876_s5 + $0x8] sm:$0xff]  }
 0x2ed   : > { %3287 = vmatpush3.bf16.msra.mxu0 %v3383_v53 }
 0x2ee   : > { %3288 = vmatprep.subr.bf16.mxu0 %v3464_v14 }
 0x2ef   : > { %v2324_v37 = vpop.permute.xlu1 %2323  ;;  %v2151_v23 = vpop.permute.xlu0 %2150 }
 0x2f0   : > { %v2571_v59 = vsel %vm1308_vm12, %v2540_v35, %v2324_v37 }
 0x2f1   : > { %v2602_v33 = vsel %vm1341_vm13, %v2571_v59, %v2354_v40  ;;  %v3384_v40 = vld [vmem:[%s4876_s5 + $0x10] sm:$0xff]  }
 0x2f2   : > { %3277 = vmatmul.mubr.msk.bf16.gmra.mrb[24].mxu1 %vm1417_vm14, %v2602_v33  ;;  %3289 = vmatpush3.bf16.msra.mxu0 %v3384_v40 }
 0x2f3   : > { %v2046_v15 = vpop.permute.xlu1 %2045  ;;  %v2184_v4 = vpop.permute.xlu0 %2183  ;;  %3290 = vmatprep.subr.bf16.mxu0 %v3464_v14 }
 0x2f4   : > { %v2384_v46 = vsel %vm1110_vm6, %v4545_v57, %v2046_v15 }
 0x2f5   : > { %v2414_v1 = vsel %vm1143_vm7, %v2384_v46, %v2151_v23  ;;  %v3386_v23 = vld [vmem:[%s4876_s5 + $0x20] sm:$0xff]  }
 0x2f6   : > { %v2446_v6 = vsel %vm1176_vm8, %v2414_v1, %v2184_v4  ;;  %3291 = vmatpush3.bf16.msra.mxu0 %v3385_v60 }
 0x2f7   : > { %v2048_v29 = vpop.permute.xlu1 %2047  ;;  %v2228_v10 = vpop.permute.xlu0 %2227  ;;  %3292 = vmatprep.subr.bf16.mxu0 %v3464_v14 }
 0x2f8   : > { %v2386_v52 = vsel %vm1110_vm6, %v4590_v3, %v2048_v29  ;;  %v2478_v57 = vsel %vm1209_vm9, %v2446_v6, %v2228_v10 }
 0x2fa   : > { %3293 = vmatpush3.bf16.msra.mxu0 %v3386_v23 }
 0x2fb   : > { %v2153_v28 = vpop.permute.xlu1 %2152  ;;  %v2264_v20 = vpop.permute.xlu0 %2263  ;;  %3294 = vmatprep.subr.bf16.mxu0 %v3464_v14 }
 0x2fc   : > { %v2416_v55 = vsel %vm1143_vm7, %v2386_v52, %v2153_v28  ;;  %v2510_v36 = vsel %vm1242_vm10, %v2478_v57, %v2264_v20  ;;  %v3387_v20 = vld [vmem:[%s4876_s5 + $0x28] sm:$0xff]  }
 0x2fe   : > { %3295 = vmatpush3.bf16.msra.mxu0 %v3387_v20 }
 0x2ff   : > { %v2186_v32 = vpop.permute.xlu1 %2185  ;;  %v2296_v24 = vpop.permute.xlu0 %2295  ;;  %3296 = vmatprep.subr.bf16.mxu0 %v3464_v14 }
 0x300   : > { %v2448_v0 = vsel %vm1176_vm8, %v2416_v55, %v2186_v32  ;;  %v2542_v3 = vsel %vm1275_vm11, %v2510_v36, %v2296_v24  ;;  %v3388_v24 = vld [vmem:[%s4876_s5 + $0x30] sm:$0xff]  }
 0x302   : > { %3297 = vmatpush3.bf16.msra.mxu0 %v3388_v24 }
 0x303   : > { %v2230_v30 = vpop.permute.xlu1 %2229  ;;  %v2356_v13 = vpop.permute.xlu0 %2355  ;;  %3298 = vmatprep.subr.bf16.mxu0 %v3464_v14 }
 0x304   : > { %v2480_v51 = vsel %vm1209_vm9, %v2448_v0, %v2230_v30 }
 0x307   : > { %v2266_v44 = vpop.permute.xlu1 %2265 }
 0x308   : > { %v2512_v18 = vsel %vm1242_vm10, %v2480_v51, %v2266_v44 }
 0x309   : > { %v2543_v25 = vsel %vm1275_vm11, %v2512_v18, %v4096_v54  ;;  %v3389_v18 = vld [vmem:[%s4876_s5 + $0x38] sm:$0xff]  }
 0x30a   : > { %v2574_v5 = vsel %vm1308_vm12, %v2543_v25, %v4110_v39  ;;  %3299 = vmatpush3.bf16.msra.mxu0 %v3389_v18 }
 0x30b   : > { %v2326_v2 = vpop.permute.xlu1 %2325  ;;  %v2605_v41 = vsel %vm1341_vm13, %v2574_v5, %v4124_v50 }
 0x30c   : > { %v2573_v58 = vsel %vm1308_vm12, %v2542_v3, %v2326_v2 }
 0x30d   : > { %v2604_v12 = vsel %vm1341_vm13, %v2573_v58, %v2356_v13 }
 0x30e   : > { %3280 = vmatprep.mubr.msk.bf16.mxu1 %vm1417_vm14, %v2604_v12 }
 0x30f   : > { %3281 = vmatmul.mubr.msk.bf16.gmra.mrb[28].mxu1 %vm1417_vm14, %v2605_v41 }
 0x315   : > { %v3254_v54 = vpop.f32.mrb[0].mxu1 }
 0x316   : > { %v2718_v62 = vpop.f32.mrb[1].mxu1  ;;  %v2727_v61 = vadd.f32 %v3254_v54, %v4762_v48 }
 0x317   : > { %v3255_v39 = vpop.f32.mrb[2].mxu1  ;;  %v2719_v43 = vadd.f32 %v4762_v48, %v2718_v62 }
 0x318   : > { %v2721_v45 = vpop.f32.mrb[3].mxu1  ;;  %v2730_v50 = vadd.f32 %v3255_v39, %v4762_v48 }
 0x319   : > { %v2722_v38 = vadd.f32 %v4762_v48, %v2721_v45 }
 0x31b   : > { %v2845_v22 = vadd.f32 %v2722_v38, %v2719_v43 }
 0x31d   : > { %v2846_v21 = vadd.f32 %v2845_v22, %v2727_v61 }
 0x31f   : > { %v2847_v8 = vadd.f32 %v2846_v21, %v2730_v50 }
 0x335   : > { %v3258_v11 = vpop.f32.mrb[4].mxu1 }
 0x336   : > { %v2734_v17 = vpop.f32.mrb[5].mxu1  ;;  %v2743_v42 = vadd.f32 %v3258_v11, %v4762_v48 }
 0x337   : > { %v2735_v47 = vadd.f32 %v4762_v48, %v2734_v17  ;;  %v3259_v9 = vpop.f32.mrb[6].mxu1 }
 0x338   : > { %v2737_v27 = vpop.f32.mrb[7].mxu1  ;;  %v2746_v31 = vadd.f32 %v3259_v9, %v4762_v48 }
 0x339   : > { %v2848_v49 = vadd.f32 %v2847_v8, %v2735_v47  ;;  %v2738_v63 = vadd.f32 %v4762_v48, %v2737_v27 }
 0x33b   : > { %v2849_v26 = vadd.f32 %v2848_v49, %v2738_v63 }
 0x33d   : > { %v2850_v56 = vadd.f32 %v2849_v26, %v2743_v42 }
 0x33f   : > { %v2851_v16 = vadd.f32 %v2850_v56, %v2746_v31 }
 0x355   : > { %v3262_v34 = vpop.f32.mrb[8].mxu1 }
 0x356   : > { %v2750_v19 = vpop.f32.mrb[9].mxu1  ;;  %v2759_v4 = vadd.f32 %v3262_v34, %v4762_v48 }
 0x357   : > { %v2751_v35 = vadd.f32 %v4762_v48, %v2750_v19  ;;  %v3263_v37 = vpop.f32.mrb[10].mxu1 }
 0x358   : > { %v2753_v59 = vpop.f32.mrb[11].mxu1  ;;  %v2762_v10 = vadd.f32 %v3263_v37, %v4762_v48 }
 0x359   : > { %v2852_v33 = vadd.f32 %v2851_v16, %v2751_v35  ;;  %v2754_v15 = vadd.f32 %v4762_v48, %v2753_v59 }
 0x35b   : > { %v2853_v29 = vadd.f32 %v2852_v33, %v2754_v15 }
 0x35d   : > { %v2854_v28 = vadd.f32 %v2853_v29, %v2759_v4 }
 0x35f   : > { %v2855_v32 = vadd.f32 %v2854_v28, %v2762_v10 }
 0x375   : > { %v3266_v46 = vpop.f32.mrb[12].mxu1 }
 0x376   : > { %v2766_v1 = vpop.f32.mrb[13].mxu1  ;;  %v2775_v51 = vadd.f32 %v3266_v46, %v4762_v48 }
 0x377   : > { %v2767_v30 = vadd.f32 %v4762_v48, %v2766_v1  ;;  %v3267_v52 = vpop.f32.mrb[14].mxu1 }
 0x378   : > { %v2769_v55 = vpop.f32.mrb[15].mxu1  ;;  %v2778_v57 = vadd.f32 %v3267_v52, %v4762_v48 }
 0x379   : > { %v2856_v6 = vadd.f32 %v2855_v32, %v2767_v30  ;;  %v2770_v0 = vadd.f32 %v4762_v48, %v2769_v55 }
 0x37b   : > { %v2857_v44 = vadd.f32 %v2856_v6, %v2770_v0 }
 0x37d   : > { %v2858_v25 = vadd.f32 %v2857_v44, %v2775_v51  ;;  %v2901_v51 = vld [vmem:[%s4877_s6] sm:$0x1] }
 0x37f   : > { %v2859_v36 = vadd.f32 %v2858_v25, %v2778_v57 }
 0x38a   : > { %v3270_v3 = vpop.f32.mrb[16].mxu1 }
 0x38b   : > { %v2782_v2 = vpop.f32.mrb[17].mxu1  ;;  %v2791_v54 = vadd.f32 %v3270_v3, %v4762_v48 }
 0x38c   : > { %v2783_v5 = vadd.f32 %v4762_v48, %v2782_v2  ;;  %v3271_v13 = vpop.f32.mrb[18].mxu1 }
 0x38d   : > { %v2785_v58 = vpop.f32.mrb[19].mxu1  ;;  %v2794_v39 = vadd.f32 %v3271_v13, %v4762_v48 }
 0x38e   : > { %v2860_v12 = vadd.f32 %v2859_v36, %v2783_v5  ;;  %v2786_v41 = vadd.f32 %v4762_v48, %v2785_v58 }
 0x390   : > { %v2861_v62 = vadd.f32 %v2860_v12, %v2786_v41 }
 0x392   : > { %v2862_v45 = vadd.f32 %v2861_v62, %v2791_v54 }
 0x394   : > { %v2863_v43 = vadd.f32 %v2862_v45, %v2794_v39 }
 0x3a5   : > { %v3274_v38 = vpop.f32.mrb[20].mxu1 }
 0x3a6   : > { %v2798_v61 = vpop.f32.mrb[21].mxu1  ;;  %v2807_v14 = vadd.f32 %v3274_v38, %v4762_v48 }
 0x3a7   : > { %v2799_v22 = vadd.f32 %v4762_v48, %v2798_v61  ;;  %v3275_v50 = vpop.f32.mrb[22].mxu1 }
 0x3a8   : > { %v2801_v21 = vpop.f32.mrb[23].mxu1  ;;  %v2810_v17 = vadd.f32 %v3275_v50, %v4762_v48 }
 0x3a9   : > { %v2864_v8 = vadd.f32 %v2863_v43, %v2799_v22  ;;  %v2802_v7 = vadd.f32 %v4762_v48, %v2801_v21 }
 0x3ab   : > { %v2865_v11 = vadd.f32 %v2864_v8, %v2802_v7 }
 0x3ad   : > { %v2866_v47 = vadd.f32 %v2865_v11, %v2807_v14 }
 0x3af   : > { %v2867_v9 = vadd.f32 %v2866_v47, %v2810_v17 }
 0x3c5   : > { %v3278_v27 = vpop.f32.mrb[24].mxu1 }
 0x3c6   : > { %v2814_v49 = vpop.f32.mrb[25].mxu1  ;;  %v2823_v16 = vadd.f32 %v3278_v27, %v4762_v48 }
 0x3c7   : > { %v2815_v63 = vadd.f32 %v4762_v48, %v2814_v49  ;;  %v3279_v42 = vpop.f32.mrb[26].mxu1 }
 0x3c8   : > { %v2817_v26 = vpop.f32.mrb[27].mxu1  ;;  %v2826_v40 = vadd.f32 %v3279_v42, %v4762_v48 }
 0x3c9   : > { %v2868_v31 = vadd.f32 %v2867_v9, %v2815_v63  ;;  %v2818_v56 = vadd.f32 %v4762_v48, %v2817_v26 }
 0x3cb   : > { %v2869_v53 = vadd.f32 %v2868_v31, %v2818_v56 }
 0x3cd   : > { %v2870_v60 = vadd.f32 %v2869_v53, %v2823_v16 }
 0x3cf   : > { %v2871_v34 = vadd.f32 %v2870_v60, %v2826_v40 }
 0x3e2   : > { %v3282_v19 = vpop.f32.mrb[28].mxu1 }
 0x3e3   : > { %v2830_v35 = vpop.f32.mrb[29].mxu1  ;;  %v2839_v4 = vadd.f32 %v3282_v19, %v4762_v48 }
 0x3e4   : > { %v2831_v37 = vadd.f32 %v4762_v48, %v2830_v35  ;;  %v3283_v23 = vpop.f32.mrb[30].mxu1 }
 0x3e5   : > { %v2833_v59 = vpop.f32.mrb[31].mxu1  ;;  %v2842_v10 = vadd.f32 %v3283_v23, %v4762_v48 }
 0x3e6   : > { %v2872_v33 = vadd.f32 %v2871_v34, %v2831_v37  ;;  %v2834_v15 = vadd.f32 %v4762_v48, %v2833_v59 }
 0x3e8   : > { %v2873_v29 = vadd.f32 %v2872_v33, %v2834_v15 }
 0x3ea   : > { %v2874_v28 = vadd.f32 %v2873_v29, %v2839_v4 }
 0x3ec   : > { %v2875_v32 = vadd.f32 %v2874_v28, %v2842_v10 }
 0x3ee   : > { %v2876_v46 = vrot.slane %v2875_v32, 4 }
 0x3f0   : > { %v2877_v20 = vadd.f32 %v2876_v46, %v2875_v32 }
 0x3f2   : > { %v2878_v1 = vrot.slane %v2877_v20, 2 }
 0x3f4   : > { %v2879_v30 = vadd.f32 %v2878_v1, %v2877_v20 }
 0x3f6   : > { %v2880_v52 = vrot.slane %v2879_v30, 1 }
 0x3f8   : > { %v2881_v55 = vadd.f32 %v2880_v52, %v2879_v30 }
 0x3fa   : > { %v2882_v6 = vmul.f32 0.00390625, %v2881_v55 }
 0x3fc   : > { %v2883_v0 = vmax.f32 %v2882_v6, 0.0 }
 0x3fe   : > { %v2884_v24 = vpack.c.bf16 %v2883_v0, %v2883_v0 }
 0x400   : > { %3301 = vmatmul.mubr.bf16.vlgmr.msra.gmra.mrb[32].mxu0 %v2884_v24 }
 0x4d3   : > { %v2984_v48 = vpop.f32.mrb[32].mxu0 }
 0x4d4   : > { %v2985_v44 = vadd.f32 %v2984_v48, %v2901_v51  ;;  %v3302_v18 = vpop.f32.mrb[33].mxu0 }
 0x4d5   : > { %v2987_v57 = vpop.f32.mrb[34].mxu0 }
 0x4d6   : > { %v2991_v25 = vrot.slane %v2985_v44, 7  ;;  %v3303_v36 = vpop.f32.mrb[35].mxu0 }
 0x4d8   : > { %v2994_v3 = vsel %vm534_vm1, %v2882_v6, %v2991_v25 }
 0x4d9   : > { %2995 = vst [vmem:[%s271_s18] sm:$0x3] %v2994_v3 }
 0x4da   : > { %3404 = shalt.err (!%p3401_p3)
}
 0x4db   : > { %s3405_s16 = scalar_lea.hbm %s4828_s15, 32  ;;  %s3409_s29 = scalar_lea.hbm %s4878_s7, 64 }
 0x4dc   : > { %p3406_p4 = scmp.ne.s32.totalorder %s4828_s15, %s3405_s16  ;;  %p3410_p9 = scmp.lt.u32.totalorder %s4828_s15, %s4878_s7 }
 0x4dd   : > { %p3411_p10 = scmp.lt.u32.totalorder %s3409_s29, %s3405_s16  ;;  %p3413_p12 = scmp.lt.u32.totalorder %s3405_s16, %s4828_s15 }
 0x4de   : > { %p3407_p7 = pnand %p3406_p4, %p3545_p5 }
 0x4df   : > { %p3412_p11 = por %p3411_p10, %p3410_p9 }
 0x4e0   : > { %p3408_p8 = pneg %p3407_p7 }
 0x4e1   : > { %p3414_p13 = por %p3413_p12, %p3412_p11 }
 0x4e3   : > { %p3415_p0 = pnand %p3414_p13, %p3408_p8 }
 0x4e5   : > { %3418 = shalt.err (!%p3415_p0)
}
 0x4e6   : > { %3306 = dma.vmem_to_hbm [thread:$0]  (%p3545_p5), %s4830_s8, 32, %s4828_s15, %s2997_s13  }
 0x4e7 PF: > { %p3312_p1 = scmp.ge.s32.totalorder %s3453_s27, 2  ;;  %s3022_s9 = sand.u32 1, %s3441_s24  }
 0x4e8   : > { %s3023_s19 = scalar_lea.sflag [#allocation3], %s3022_s9 }
 0x4e9   : > { %p3309_p2 = pnand %p3312_p1, %p3549_p6 }
 0x4eb   : > { %3436 = dma.done.wait (!%p3309_p2), %s3023_s19, 32  }
 0x4ec   : > { %3438 = vsyncadd (!%p3309_p2), %s3023_s19, 4294967264  ;;  %p17_p3 = scmp.ge.s32.totalorder %s3532_s30, 4   ;;  %s4883_s24 = smov %s3445_s25 }
 0x4ed   : > { %s4884_s25 = smov %s3449_s26  ;;  %s4885_s26 = smov %s3543_s10 }
 0x4ee   : > { %s4886_s27 = smov %s3532_s30  ;;  %19 = sbr.rel (!%p17_p3) target bundleno = 3 (0x3), region = 83 }
 0x4f5   :  { %3028 = vsyncpa [#allocation3], 1 }
 0x4f6   :  { %3030 = vsyncpa [#allocation3 + $0x1], 1 }

</bundles_post_ra>
